<compile_context>
chip_gen: v6e
topology: v6e:2x2x1
jax: 0.10.0
libtpu: 0.0.40
codegen_flags: <defaults>
</compile_context>

<pallas_src>
import jax
import jax.numpy as jnp
from jax.experimental import pallas as pl
from jax.experimental.pallas import tpu as pltpu

# ----------------------- configuration -----------------------
EMBED_SIZE = 4
LAYER_SIZE = 32
LATENT_DIM = 8
CAT_SIZES = (5, 7)          # categorical feature cardinalities
NUM_COLS = 3                # number of real-valued features

SIZE_INPUT = len(CAT_SIZES) * EMBED_SIZE + NUM_COLS    # 11
SIZE_OUT_X = sum(CAT_SIZES) + NUM_COLS                 # 15

LANES = 128                 # lane width of the weight/output slabs
X_WIDTH = 8                 # lane width of the (narrow) input slab
TB_MIN = 128                # minimum batch-tile rows (sublane-aligned)
TB_MAX = 1024               # cap keeps double-buffered tiles << VMEM
BATCH = 256                 # example batch

# x_data column layout (raw): [categ0_idx, categ1_idx, real0, real1, real2]
REAL_LANE = 2               # first real feature column
OH0_LANE = 8                # one-hot(categ 0) occupies lanes 8..12 of `oh`
OH1_LANE = 16               # one-hot(categ 1) occupies lanes 16..22 of `oh`

# lane layout of the packed OUTPUT slab (live data contiguous in lanes 0:32)
X_LANE = 0                  # xrec   at lanes 0..14
MU_LANE = 16                # mu     at lanes 16..23
LV_LANE = 24                # logvar at lanes 24..31

# row layout of the packed PARAMETER slab (P_ROWS x 128 lanes, f32)
W1E_ROW = 0                 # rows   0:128, cols 0:32  (fc1, embeddings folded into one-hot rows)
W3_ROW = 128                # rows 128:256, cols 0:32  (fc3; rows MU_LANE:MU_LANE+8 live)
W2_ROW = 256                # rows 256:288, cols 0:128 (fused fc21|fc22 -> mu/logvar lanes)
WOUT_ROW = 288              # rows 288:320, cols 0:128 (concatenated out_cat_linears)
W1R_ROW = 320               # rows 320:323, cols 0:32  (fc1 rows for the 3 real features)
B1_ROW = 323
B3_ROW = 324
B2_ROW = 325
BOUT_ROW = 326
P_ROWS = 328                # padded to a multiple of 8 sublanes


# ----------------------- Pallas kernel -----------------------
def vae_kernel(x_ref, p_ref, out_ref):
    f32 = jnp.float32
    xn = x_ref[...]                                            # (TB, 8) narrow input
    tb = xn.shape[0]
    col = jax.lax.broadcasted_iota(jnp.int32, (tb, LANES), 1)  # lane index

    # ---- get_inputs(): categorical indices -> lane-dense one-hot array.
    # The renormed embedding tables were folded into w1e at pack time, so
    # oh @ w1e == concat(emb0[i0], emb1[i1]) @ fc1.W[:2E].
    i0 = xn[:, 0:1].astype(jnp.int32)
    i1 = xn[:, 1:2].astype(jnp.int32)
    oh = (col == i0 + OH0_LANE).astype(f32) + (col == i1 + OH1_LANE).astype(f32)

    # ---- encoder: h1 = relu(fc1(x)).  Categorical part via MXU, the 3 real
    # columns via rank-1 broadcast FMAs (tiny, rides the VPU slot).
    w1e = p_ref[W1E_ROW:W1E_ROW + LANES, 0:LAYER_SIZE]         # (128, 32)
    b1 = p_ref[B1_ROW:B1_ROW + 1, 0:LAYER_SIZE]                # (1, 32)
    h1 = jnp.dot(oh, w1e, preferred_element_type=f32) + b1
    for j in range(NUM_COLS):
        wr = p_ref[W1R_ROW + j:W1R_ROW + j + 1, 0:LAYER_SIZE]  # (1, 32)
        h1 = h1 + xn[:, REAL_LANE + j:REAL_LANE + j + 1] * wr
    h1 = jnp.maximum(h1, 0.0)

    # ---- [mu | logvar] via fused fc21/fc22 (mu @ lanes 16:24, logvar @ 24:32)
    w2 = p_ref[W2_ROW:W2_ROW + LAYER_SIZE, :]                  # (32, 128)
    b2 = p_ref[B2_ROW:B2_ROW + 1, :]
    enc = jnp.dot(h1, w2, preferred_element_type=f32) + b2

    # ---- reparameterize (eval mode): z = mu.  fc3's weight sits in rows
    # MU_LANE:MU_LANE+LATENT_DIM of w3 (other rows zero), so
    # enc @ w3 == mu @ fc3.weight with no lane extraction needed.
    w3 = p_ref[W3_ROW:W3_ROW + LANES, 0:LAYER_SIZE]            # (128, 32)
    b3 = p_ref[B3_ROW:B3_ROW + 1, 0:LAYER_SIZE]
    h3 = jnp.maximum(jnp.dot(enc, w3, preferred_element_type=f32) + b3, 0.0)

    wout = p_ref[WOUT_ROW:WOUT_ROW + LAYER_SIZE, :]            # (32, 128): logits@0:15
    bout = p_ref[BOUT_ROW:BOUT_ROW + 1, :]
    dec = jnp.dot(h3, wout, preferred_element_type=f32) + bout

    # ---- per-categorical-block log-softmax (dim=1) via full-width masked
    # reductions (no lane-slice relayouts); real columns (12:15) pass through.
    corr = jnp.zeros_like(dec)
    start = 0
    for c in CAT_SIZES:
        mask = (col >= start) & (col < start + c)
        m = jnp.max(jnp.where(mask, dec, -jnp.inf), axis=1, keepdims=True)
        e = jnp.exp(jnp.where(mask, dec - m, -jnp.inf))        # exp(-inf) == 0
        lse = m + jnp.log(jnp.sum(e, axis=1, keepdims=True))
        corr = jnp.where(mask, lse, corr)
        start += c

    # enc (lanes 16:32) and dec (lanes 0:15) are disjoint, so the packed
    # output is one full-width unmasked store.
    out_ref[...] = (dec - corr) + enc


# ----------------------- parameter packing (once, at init) -----------------------
def _renorm_max1(w):
    # nn.Embedding(max_norm=1): rows with L2 norm > 1 are rescaled to norm 1.
    n = jnp.sqrt(jnp.sum(w * w, axis=1, keepdims=True))
    return w * jnp.minimum(1.0, 1.0 / jnp.maximum(n, 1e-7))


def pack_params(params):
    """Fold embeddings into fc1, fuse fc21/fc22, pad everything to 128 lanes.
    Hoisted out of the per-call path (renorm + all weight concats happen once)."""
    f32 = jnp.float32
    e0 = _renorm_max1(params['emb0'].astype(f32))
    e1 = _renorm_max1(params['emb1'].astype(f32))
    w1, b1 = params['w1'], params['b1']

    slab = jnp.zeros((P_ROWS, LANES), f32)
    # fc1: embedding tables folded into the one-hot rows
    slab = slab.at[W1E_ROW + OH0_LANE:W1E_ROW + OH0_LANE + CAT_SIZES[0],
                   0:LAYER_SIZE].set(e0 @ w1[0:EMBED_SIZE, :])
    slab = slab.at[W1E_ROW + OH1_LANE:W1E_ROW + OH1_LANE + CAT_SIZES[1],
                   0:LAYER_SIZE].set(e1 @ w1[EMBED_SIZE:2 * EMBED_SIZE, :])
    # fc1 rows for the real features (consumed as rank-1 broadcasts)
    slab = slab.at[W1R_ROW:W1R_ROW + NUM_COLS,
                   0:LAYER_SIZE].set(w1[2 * EMBED_SIZE:, :])
    slab = slab.at[B1_ROW, 0:LAYER_SIZE].set(b1[0])
    # fused fc21 | fc22 -> contiguous mu / logvar lanes of the packed output
    slab = slab.at[W2_ROW:W2_ROW + LAYER_SIZE,
                   MU_LANE:MU_LANE + LATENT_DIM].set(params['w21'])
    slab = slab.at[W2_ROW:W2_ROW + LAYER_SIZE,
                   LV_LANE:LV_LANE + LATENT_DIM].set(params['w22'])
    slab = slab.at[B2_ROW, MU_LANE:MU_LANE + LATENT_DIM].set(params['b21'][0])
    slab = slab.at[B2_ROW, LV_LANE:LV_LANE + LATENT_DIM].set(params['b22'][0])
    # fc3 consumes mu straight from the enc-slab lanes
    slab = slab.at[W3_ROW + MU_LANE:W3_ROW + MU_LANE + LATENT_DIM,
                   0:LAYER_SIZE].set(params['w3'])
    slab = slab.at[B3_ROW, 0:LAYER_SIZE].set(params['b3'][0])
    # concatenated output heads (2 categ heads of widths 5/7, 3 real heads of width 1)
    slab = slab.at[WOUT_ROW:WOUT_ROW + LAYER_SIZE, 0:SIZE_OUT_X].set(params['wout'])
    slab = slab.at[BOUT_ROW, 0:SIZE_OUT_X].set(params['bout'][0])
    return {'slab': slab, 'logvar_x': params['logvar_x']}


# ----------------------- tiling policy -----------------------
def _round_up(n, m):
    return ((n + m - 1) // m) * m


def _tiling(batch):
    """At most a 2-step grid (overhead amortization on single-TC chips) while
    keeping 2 steps whenever possible so v7x shards across both TensorCores."""
    bp = _round_up(max(int(batch), 1), TB_MIN)
    tb = min(TB_MAX, max(TB_MIN, _round_up((bp + 1) // 2, TB_MIN)))
    bp = _round_up(bp, tb)
    return bp, tb


# ----------------------- wrapper (pad + pallas_call + slice) -----------------------
def vae_forward(x_data, packed):
    f32 = jnp.float32
    B, C = x_data.shape
    Bp, tb = _tiling(B)

    # narrow input slab: raw x_data columns at lanes 0:5, rest zero (8 lanes total)
    x_slab = jnp.zeros((Bp, X_WIDTH), f32).at[:B, :C].set(x_data.astype(f32))

    out = pl.pallas_call(
        vae_kernel,
        out_shape=jax.ShapeDtypeStruct((Bp, LANES), f32),
        grid=(Bp // tb,),
        in_specs=[
            pl.BlockSpec((tb, X_WIDTH), lambda b: (b, 0)),
            pl.BlockSpec((P_ROWS, LANES), lambda b: (0, 0)),   # weights stay VMEM-resident
        ],
        out_specs=pl.BlockSpec((tb, LANES), lambda b: (b, 0)),
        compiler_params=pltpu.CompilerParams(dimension_semantics=("parallel",)),
    )(x_slab, packed['slab'])

    # one contiguous slice of the live lanes, then cheap in-register splits
    live = out[:B, :LV_LANE + LATENT_DIM]                      # (B, 32)
    xrec = live[:, X_LANE:X_LANE + SIZE_OUT_X]
    mu = live[:, MU_LANE:MU_LANE + LATENT_DIM]
    logvar = live[:, LV_LANE:LV_LANE + LATENT_DIM]

    p_params = {'x': xrec, 'logvar_x': jnp.clip(packed['logvar_x'], -3.0, 3.0)}
    q_params = {'z': {'mu': mu, 'logvar': logvar}}
    q_samples = {'z': mu}          # eval-mode sample_normal returns mu
    return p_params, q_params, q_samples


# ----------------------- pure-JAX reference (mirrors the torch module) -----------------------
def vae_ref(x_data, params):
    hp = jax.lax.Precision.HIGHEST
    e0 = _renorm_max1(params['emb0'])[x_data[:, 0].astype(jnp.int32)]
    e1 = _renorm_max1(params['emb1'])[x_data[:, 1].astype(jnp.int32)]
    x_in = jnp.concatenate([e0, e1, x_data[:, 2:2 + NUM_COLS]], axis=1)
    h1 = jax.nn.relu(jnp.dot(x_in, params['w1'], precision=hp) + params['b1'])
    mu = jnp.dot(h1, params['w21'], precision=hp) + params['b21']
    logvar = jnp.dot(h1, params['w22'], precision=hp) + params['b22']
    h3 = jax.nn.relu(jnp.dot(mu, params['w3'], precision=hp) + params['b3'])
    logits = jnp.dot(h3, params['wout'], precision=hp) + params['bout']
    parts, start = [], 0
    for c in CAT_SIZES:
        parts.append(jax.nn.log_softmax(logits[:, start:start + c], axis=1))
        start += c
    parts.append(logits[:, start:])
    return jnp.concatenate(parts, axis=1), mu, logvar


# ----------------------- deterministic param init -----------------------
def init_params(key):
    ks = jax.random.split(key, 12)

    def linear(kw, kb, fan_in, fan_out):
        bound = 1.0 / (fan_in ** 0.5)
        w = jax.random.uniform(kw, (fan_in, fan_out), jnp.float32, -bound, bound)
        b = jax.random.uniform(kb, (1, fan_out), jnp.float32, -bound, bound)
        return w, b

    params = {}
    params['emb0'] = jax.random.normal(ks[0], (CAT_SIZES[0], EMBED_SIZE), jnp.float32)
    params['emb1'] = jax.random.normal(ks[1], (CAT_SIZES[1], EMBED_SIZE), jnp.float32)
    params['w1'], params['b1'] = linear(ks[2], ks[3], SIZE_INPUT, LAYER_SIZE)
    params['w21'], params['b21'] = linear(ks[4], ks[5], LAYER_SIZE, LATENT_DIM)
    params['w22'], params['b22'] = linear(ks[6], ks[7], LAYER_SIZE, LATENT_DIM)
    params['w3'], params['b3'] = linear(ks[8], ks[9], LATENT_DIM, LAYER_SIZE)
    params['wout'], params['bout'] = linear(ks[10], ks[11], LAYER_SIZE, SIZE_OUT_X)
    params['logvar_x'] = jnp.zeros((1, NUM_COLS), jnp.float32)
    return params


# ----------------------- main -----------------------
if __name__ == "__main__":
    key = jax.random.PRNGKey(0)
    kp, kc0, kc1, kr = jax.random.split(key, 4)

    params = init_params(kp)
    packed = pack_params(params)          # one-time fold / renorm / pad

    # x_data layout matches the torch module: categ columns hold integer
    # indices, real columns hold floats.  shape (BATCH, 5)
    idx0 = jax.random.randint(kc0, (BATCH, 1), 0, CAT_SIZES[0]).astype(jnp.float32)
    idx1 = jax.random.randint(kc1, (BATCH, 1), 0, CAT_SIZES[1]).astype(jnp.float32)
    reals = jax.random.normal(kr, (BATCH, NUM_COLS), jnp.float32)
    x_data = jnp.concatenate([idx0, idx1, reals], axis=1)

    fwd = jax.jit(vae_forward)
    p_params, q_params, q_samples = fwd(x_data, packed)
    jax.block_until_ready((p_params, q_params, q_samples))

    # shape checks
    assert p_params['x'].shape == (BATCH, SIZE_OUT_X)
    assert q_params['z']['mu'].shape == (BATCH, LATENT_DIM)
    assert q_params['z']['logvar'].shape == (BATCH, LATENT_DIM)
    assert bool(jnp.all(jnp.isfinite(p_params['x'])))

    # correctness vs pure-JAX reference (loose tolerance to cover MXU rounding)
    xrec_r, mu_r, lv_r = vae_ref(x_data, params)
    assert bool(jnp.allclose(p_params['x'], xrec_r, rtol=2e-2, atol=2e-2))
    assert bool(jnp.allclose(q_params['z']['mu'], mu_r, rtol=2e-2, atol=2e-2))
    assert bool(jnp.allclose(q_params['z']['logvar'], lv_r, rtol=2e-2, atol=2e-2))

    print("KERNEL_OK")
</pallas_src>

<mosaic_0001>
module attributes {stable_mosaic.version = 11 : i64} {
  func.func @vae_kernel(%arg0: i32, %arg1: memref<128x8xf32, #tpu.memory_space<vmem>>, %arg2: memref<328x128xf32, #tpu.memory_space<vmem>>, %arg3: memref<128x128xf32, #tpu.memory_space<vmem>>) attributes {dimension_semantics = [#tpu.dimension_semantics<parallel>], iteration_bounds = array<i64: 2>, scalar_prefetch = 0 : i64, scratch_operands = 0 : i64, tpu.core_type = #tpu.core_type<tc>, window_params = [{transform_indices = @transform_0, window_bounds = array<i64: 128, 8>}, {pipeline_mode = #tpu.pipeline_mode<synchronous>, transform_indices = @transform_1, window_bounds = array<i64: 328, 128>}, {transform_indices = @transform_2, window_bounds = array<i64: 128, 128>}]} {
    %c0 = arith.constant 0 : index
    %c0_0 = arith.constant 0 : index
    %0 = vector.load %arg1[%c0, %c0_0] : memref<128x8xf32, #tpu.memory_space<vmem>>, vector<128x8xf32>
    %1 = tpu.iota {dimensions = array<i32: 1>} : vector<128x128xi32>
    %2 = vector.extract_strided_slice %0 {offsets = [0, 0], sizes = [128, 1], strides = [1, 1]} : vector<128x8xf32> to vector<128x1xf32>
    %3 = arith.fptosi %2 : vector<128x1xf32> to vector<128x1xi32>
    %4 = vector.extract_strided_slice %0 {offsets = [0, 1], sizes = [128, 1], strides = [1, 1]} : vector<128x8xf32> to vector<128x1xf32>
    %5 = arith.fptosi %4 : vector<128x1xf32> to vector<128x1xi32>
    %c8_i32 = arith.constant 8 : i32
    %6 = vector.broadcast %c8_i32 : i32 to vector<128x1xi32>
    %7 = arith.addi %3, %6 : vector<128x1xi32>
    %8 = vector.broadcast %7 : vector<128x1xi32> to vector<128x128xi32>
    %9 = arith.cmpi eq, %1, %8 : vector<128x128xi32>
    %10 = arith.extui %9 : vector<128x128xi1> to vector<128x128xi32>
    %11 = arith.sitofp %10 : vector<128x128xi32> to vector<128x128xf32>
    %c16_i32 = arith.constant 16 : i32
    %12 = vector.broadcast %c16_i32 : i32 to vector<128x1xi32>
    %13 = arith.addi %5, %12 : vector<128x1xi32>
    %14 = vector.broadcast %13 : vector<128x1xi32> to vector<128x128xi32>
    %15 = arith.cmpi eq, %1, %14 : vector<128x128xi32>
    %16 = arith.extui %15 : vector<128x128xi1> to vector<128x128xi32>
    %17 = arith.sitofp %16 : vector<128x128xi32> to vector<128x128xf32>
    %18 = arith.addf %11, %17 : vector<128x128xf32>
    %c0_1 = arith.constant 0 : index
    %c0_2 = arith.constant 0 : index
    %19 = vector.load %arg2[%c0_1, %c0_2] : memref<328x128xf32, #tpu.memory_space<vmem>>, vector<128x32xf32>
    %c323 = arith.constant 323 : index
    %c0_3 = arith.constant 0 : index
    %20 = vector.load %arg2[%c323, %c0_3] : memref<328x128xf32, #tpu.memory_space<vmem>>, vector<1x32xf32>
    %cst = arith.constant dense<0.000000e+00> : vector<128x32xf32>
    %21 = tpu.matmul %18, %19, %cst {dimension_numbers = #tpu.dot_dimension_numbers<[1], [0], [0], [1], [0, 0, 1, 1], [], []>} : vector<128x128xf32>, vector<128x32xf32>, vector<128x32xf32> -> vector<128x32xf32>
    %22 = vector.broadcast %20 : vector<1x32xf32> to vector<128x32xf32>
    %23 = arith.addf %21, %22 : vector<128x32xf32>
    %c320 = arith.constant 320 : index
    %c0_4 = arith.constant 0 : index
    %24 = vector.load %arg2[%c320, %c0_4] : memref<328x128xf32, #tpu.memory_space<vmem>>, vector<1x32xf32>
    %25 = vector.extract_strided_slice %0 {offsets = [0, 2], sizes = [128, 1], strides = [1, 1]} : vector<128x8xf32> to vector<128x1xf32>
    %26 = vector.broadcast %25 : vector<128x1xf32> to vector<128x32xf32>
    %27 = vector.broadcast %24 : vector<1x32xf32> to vector<128x32xf32>
    %28 = arith.mulf %26, %27 : vector<128x32xf32>
    %29 = arith.addf %23, %28 : vector<128x32xf32>
    %c321 = arith.constant 321 : index
    %c0_5 = arith.constant 0 : index
    %30 = vector.load %arg2[%c321, %c0_5] : memref<328x128xf32, #tpu.memory_space<vmem>>, vector<1x32xf32>
    %31 = vector.extract_strided_slice %0 {offsets = [0, 3], sizes = [128, 1], strides = [1, 1]} : vector<128x8xf32> to vector<128x1xf32>
    %32 = vector.broadcast %31 : vector<128x1xf32> to vector<128x32xf32>
    %33 = vector.broadcast %30 : vector<1x32xf32> to vector<128x32xf32>
    %34 = arith.mulf %32, %33 : vector<128x32xf32>
    %35 = arith.addf %29, %34 : vector<128x32xf32>
    %c322 = arith.constant 322 : index
    %c0_6 = arith.constant 0 : index
    %36 = vector.load %arg2[%c322, %c0_6] : memref<328x128xf32, #tpu.memory_space<vmem>>, vector<1x32xf32>
    %37 = vector.extract_strided_slice %0 {offsets = [0, 4], sizes = [128, 1], strides = [1, 1]} : vector<128x8xf32> to vector<128x1xf32>
    %38 = vector.broadcast %37 : vector<128x1xf32> to vector<128x32xf32>
    %39 = vector.broadcast %36 : vector<1x32xf32> to vector<128x32xf32>
    %40 = arith.mulf %38, %39 : vector<128x32xf32>
    %41 = arith.addf %35, %40 : vector<128x32xf32>
    %cst_7 = arith.constant 0.000000e+00 : f32
    %42 = vector.broadcast %cst_7 : f32 to vector<128x32xf32>
    %43 = arith.maximumf %41, %42 : vector<128x32xf32>
    %c256 = arith.constant 256 : index
    %c0_8 = arith.constant 0 : index
    %44 = vector.load %arg2[%c256, %c0_8] : memref<328x128xf32, #tpu.memory_space<vmem>>, vector<32x128xf32>
    %c325 = arith.constant 325 : index
    %c0_9 = arith.constant 0 : index
    %45 = vector.load %arg2[%c325, %c0_9] : memref<328x128xf32, #tpu.memory_space<vmem>>, vector<1x128xf32>
    %cst_10 = arith.constant dense<0.000000e+00> : vector<128x128xf32>
    %46 = tpu.matmul %43, %44, %cst_10 {dimension_numbers = #tpu.dot_dimension_numbers<[1], [0], [0], [1], [0, 0, 1, 1], [], []>} : vector<128x32xf32>, vector<32x128xf32>, vector<128x128xf32> -> vector<128x128xf32>
    %47 = vector.broadcast %45 : vector<1x128xf32> to vector<128x128xf32>
    %48 = arith.addf %46, %47 : vector<128x128xf32>
    %c128 = arith.constant 128 : index
    %c0_11 = arith.constant 0 : index
    %49 = vector.load %arg2[%c128, %c0_11] : memref<328x128xf32, #tpu.memory_space<vmem>>, vector<128x32xf32>
    %c324 = arith.constant 324 : index
    %c0_12 = arith.constant 0 : index
    %50 = vector.load %arg2[%c324, %c0_12] : memref<328x128xf32, #tpu.memory_space<vmem>>, vector<1x32xf32>
    %cst_13 = arith.constant dense<0.000000e+00> : vector<128x32xf32>
    %51 = tpu.matmul %48, %49, %cst_13 {dimension_numbers = #tpu.dot_dimension_numbers<[1], [0], [0], [1], [0, 0, 1, 1], [], []>} : vector<128x128xf32>, vector<128x32xf32>, vector<128x32xf32> -> vector<128x32xf32>
    %52 = vector.broadcast %50 : vector<1x32xf32> to vector<128x32xf32>
    %53 = arith.addf %51, %52 : vector<128x32xf32>
    %cst_14 = arith.constant 0.000000e+00 : f32
    %54 = vector.broadcast %cst_14 : f32 to vector<128x32xf32>
    %55 = arith.maximumf %53, %54 : vector<128x32xf32>
    %c288 = arith.constant 288 : index
    %c0_15 = arith.constant 0 : index
    %56 = vector.load %arg2[%c288, %c0_15] : memref<328x128xf32, #tpu.memory_space<vmem>>, vector<32x128xf32>
    %c326 = arith.constant 326 : index
    %c0_16 = arith.constant 0 : index
    %57 = vector.load %arg2[%c326, %c0_16] : memref<328x128xf32, #tpu.memory_space<vmem>>, vector<1x128xf32>
    %cst_17 = arith.constant dense<0.000000e+00> : vector<128x128xf32>
    %58 = tpu.matmul %55, %56, %cst_17 {dimension_numbers = #tpu.dot_dimension_numbers<[1], [0], [0], [1], [0, 0, 1, 1], [], []>} : vector<128x32xf32>, vector<32x128xf32>, vector<128x128xf32> -> vector<128x128xf32>
    %59 = vector.broadcast %57 : vector<1x128xf32> to vector<128x128xf32>
    %60 = arith.addf %58, %59 : vector<128x128xf32>
    %cst_18 = arith.constant 0.000000e+00 : f32
    %61 = vector.broadcast %cst_18 : f32 to vector<128x128xf32>
    %c0_i32 = arith.constant 0 : i32
    %62 = vector.broadcast %c0_i32 : i32 to vector<128x128xi32>
    %63 = arith.cmpi sge, %1, %62 : vector<128x128xi32>
    %c5_i32 = arith.constant 5 : i32
    %64 = vector.broadcast %c5_i32 : i32 to vector<128x128xi32>
    %65 = arith.cmpi slt, %1, %64 : vector<128x128xi32>
    %66 = arith.andi %63, %65 : vector<128x128xi1>
    %cst_19 = arith.constant 0xFF800000 : f32
    %67 = vector.broadcast %cst_19 : f32 to vector<128x128xf32>
    %68 = arith.select %66, %60, %67 : vector<128x128xi1>, vector<128x128xf32>
    %cst_20 = arith.constant dense<0xFF800000> : vector<128xf32>
    %69 = vector.multi_reduction <maximumf>, %68, %cst_20 [1] : vector<128x128xf32> to vector<128xf32>
    %70 = vector.shape_cast %69 : vector<128xf32> to vector<128x1xf32>
    %71 = vector.broadcast %70 : vector<128x1xf32> to vector<128x128xf32>
    %72 = arith.subf %60, %71 : vector<128x128xf32>
    %cst_21 = arith.constant 0xFF800000 : f32
    %73 = vector.broadcast %cst_21 : f32 to vector<128x128xf32>
    %74 = arith.select %66, %72, %73 : vector<128x128xi1>, vector<128x128xf32>
    %75 = math.exp %74 : vector<128x128xf32>
    %cst_22 = arith.constant dense<0.000000e+00> : vector<128xf32>
    %76 = vector.multi_reduction <add>, %75, %cst_22 [1] : vector<128x128xf32> to vector<128xf32>
    %77 = vector.shape_cast %76 : vector<128xf32> to vector<128x1xf32>
    %78 = math.log %77 : vector<128x1xf32>
    %79 = arith.addf %70, %78 : vector<128x1xf32>
    %80 = vector.shape_cast %79 : vector<128x1xf32> to vector<128x1xf32>
    %81 = vector.broadcast %80 : vector<128x1xf32> to vector<128x128xf32>
    %82 = arith.select %66, %81, %61 : vector<128x128xi1>, vector<128x128xf32>
    %c5_i32_23 = arith.constant 5 : i32
    %83 = vector.broadcast %c5_i32_23 : i32 to vector<128x128xi32>
    %84 = arith.cmpi sge, %1, %83 : vector<128x128xi32>
    %c12_i32 = arith.constant 12 : i32
    %85 = vector.broadcast %c12_i32 : i32 to vector<128x128xi32>
    %86 = arith.cmpi slt, %1, %85 : vector<128x128xi32>
    %87 = arith.andi %84, %86 : vector<128x128xi1>
    %cst_24 = arith.constant 0xFF800000 : f32
    %88 = vector.broadcast %cst_24 : f32 to vector<128x128xf32>
    %89 = arith.select %87, %60, %88 : vector<128x128xi1>, vector<128x128xf32>
    %cst_25 = arith.constant dense<0xFF800000> : vector<128xf32>
    %90 = vector.multi_reduction <maximumf>, %89, %cst_25 [1] : vector<128x128xf32> to vector<128xf32>
    %91 = vector.shape_cast %90 : vector<128xf32> to vector<128x1xf32>
    %92 = vector.broadcast %91 : vector<128x1xf32> to vector<128x128xf32>
    %93 = arith.subf %60, %92 : vector<128x128xf32>
    %cst_26 = arith.constant 0xFF800000 : f32
    %94 = vector.broadcast %cst_26 : f32 to vector<128x128xf32>
    %95 = arith.select %87, %93, %94 : vector<128x128xi1>, vector<128x128xf32>
    %96 = math.exp %95 : vector<128x128xf32>
    %cst_27 = arith.constant dense<0.000000e+00> : vector<128xf32>
    %97 = vector.multi_reduction <add>, %96, %cst_27 [1] : vector<128x128xf32> to vector<128xf32>
    %98 = vector.shape_cast %97 : vector<128xf32> to vector<128x1xf32>
    %99 = math.log %98 : vector<128x1xf32>
    %100 = arith.addf %91, %99 : vector<128x1xf32>
    %101 = vector.shape_cast %100 : vector<128x1xf32> to vector<128x1xf32>
    %102 = vector.broadcast %101 : vector<128x1xf32> to vector<128x128xf32>
    %103 = arith.select %87, %102, %82 : vector<128x128xi1>, vector<128x128xf32>
    %104 = arith.subf %60, %103 : vector<128x128xf32>
    %105 = arith.addf %104, %48 : vector<128x128xf32>
    %c0_28 = arith.constant 0 : index
    %c0_29 = arith.constant 0 : index
    %106 = vector.load %arg3[%c0_28, %c0_29] : memref<128x128xf32, #tpu.memory_space<vmem>>, vector<128x128xf32>
    tpu.vector_store %arg3[%c0_28, %c0_29], %105 {strides = array<i32>} : memref<128x128xf32, #tpu.memory_space<vmem>>, vector<128x128xf32>,
    return
  }
  func.func @transform_0(%arg0: i32) -> (i32, i32) {
    %c0_i32 = arith.constant 0 : i32
    %c0_i32_0 = arith.constant 0 : i32
    return %arg0, %c0_i32 : i32, i32
  }
  func.func @transform_1(%arg0: i32) -> (i32, i32) {
    %c0_i32 = arith.constant 0 : i32
    %c0_i32_0 = arith.constant 0 : i32
    %c0_i32_1 = arith.constant 0 : i32
    return %c0_i32, %c0_i32_0 : i32, i32
  }
  func.func @transform_2(%arg0: i32) -> (i32, i32) {
    %c0_i32 = arith.constant 0 : i32
    %c0_i32_0 = arith.constant 0 : i32
    return %arg0, %c0_i32 : i32, i32
  }
}

</mosaic_0001>

<bundles_post_ra>
// kernel: vae_forward.1
= control target key start
LH: loop header
LB: loop body
LE: loop exit
PB: predicated region body
PF: predicated region fallthrough
CT: control target
= control target key end

     0   :  { %s2640_s9 = smov 0   ;;  %s3734_s0 = inlined_call_operand.vmem [shape: f32[256,8], index: 0, kind: input, shape index: {}]   ;;  %s3735_s1 = inlined_call_operand.vmem [shape: f32[328,128], index: 1, kind: input, shape index: {}]   ;;  %s3736_s2 = inlined_call_operand.vmem [shape: f32[256,128], index: 2, kind: output, shape index: {}]  }
   0x1 LB: > { %s2035_s10 = sadd.s32 4294967295, %s2617_s9   ;;  %p2039_p0 = scmp.ge.s32.totalorder %s2617_s9, 1  ;;  %s2617_s9 = sphi %s2640_s9, %s12_s9  }
   0x2   : > { %p113_p1 = scmp.lt.s32.totalorder %s2617_s9, 3 }
   0x4   : > { %p114_p2 = pnand %p2039_p0, %p113_p1 }
   0x6   : > { %117 = sbr.rel (%p114_p2) target bundleno = 1340 (0x53c), region = 28 }
   0xb   : > { %s2040_s11 = sshll.u32 %s2035_s10, 4  ;;  %v436_v0 = vld [vmem:[%s3735_s1 + $0x78] sm:$0xff]  ;;  %v2619_v1 = vmov 0   ;;  %v435_v2 = vld [vmem:[%s3735_s1 + $0x70] sm:$0xff]  ;;  %v434_v3 = vld [vmem:[%s3735_s1 + $0x68] sm:$0xff]  ;;  %v2620_v25 = vmov 1  }
   0xc   : > { %2453 = vset.pattern.permute.xlu1 %v2619_v1  ;;  %2451 = vset.pattern.permute.xlu0 %v2619_v1  ;;  %p136_p3 = scmp.lt.s32.totalorder %s2040_s11, 31  ;;  %v433_v4 = vld [vmem:[%s3735_s1 + $0x60] sm:$0xff]  ;;  %v432_v7 = vld [vmem:[%s3735_s1 + $0x58] sm:$0xff]  ;;  %v431_v11 = vld [vmem:[%s3735_s1 + $0x50] sm:$0xff] }
   0xd   : > { %2221 = vmatprep.subr.mxu0 %v436_v0  ;;  %v430_v18 = vld [vmem:[%s3735_s1 + $0x48] sm:$0xff]  ;;  %v429_v19 = vld [vmem:[%s3735_s1 + $0x40] sm:$0xff]  ;;  %v428_v26 = vld [vmem:[%s3735_s1 + $0x38] sm:$0xff] }
   0xe   : > { %s3791_s11 = smov (!%p136_p3, %s2040_s11), 31  ;;  %2222 = vmatpush3.msra.mxu0 %v436_v0  ;;  %v427_v32 = vld [vmem:[%s3735_s1 + $0x30] sm:$0xff]  ;;  %v426_v36 = vld [vmem:[%s3735_s1 + $0x28] sm:$0xff]  ;;  %v425_v39 = vld [vmem:[%s3735_s1 + $0x20] sm:$0xff] }
   0xf   : > { %2223 = vmatprep.subr.mxu0 %v435_v2  ;;  %s2041_s18 = sshll.u32 %s3791_s11, 3  ;;  %v424_v43 = vld [vmem:[%s3735_s1 + $0x18] sm:$0xff]  ;;  %v423_v46 = vld [vmem:[%s3735_s1 + $0x10] sm:$0xff]  ;;  %v422_v50 = vld [vmem:[%s3735_s1 + $0x8] sm:$0xff] }
  0x10   : > { %2224 = vmatpush3.msra.mxu0 %v435_v2  ;;  %s2668_s23 = scalar_lea.vmem %s3734_s0, %s2041_s18  ;;  %v421_v53 = vld [vmem:[%s3735_s1] sm:$0xff]  ;;  %s3596_s10 = scalar_lea.vmem %s3736_s2, %s2041_s18 }
  0x11   : > { %2225 = vmatprep.subr.mxu0 %v434_v3  ;;  %v2671_v5 = vld [vmem:[%s2668_s23 + $0x8] sm:$0xff]  ;;  %v2674_v6 = vld [vmem:[%s2668_s23] sm:$0xff]  ;;  %v2682_v10 = vld [vmem:[%s2668_s23 + $0x10] sm:$0xff] }
  0x12   : > { %2226 = vmatpush3.msra.mxu0 %v434_v3  ;;  %v2407_v8 = vtrunc.f32 %v2671_v5  ;;  %v2405_v9 = vtrunc.f32 %v2674_v6  ;;  %v2409_v14 = vtrunc.f32 %v2682_v10  ;;  %v2689_v17 = vld [vmem:[%s2668_s23 + $0x18] sm:$0xff]  ;;  %v2699_v24 = vld [vmem:[%s2668_s23 + $0x20] sm:$0xff]  ;;  %v2706_v31 = vld [vmem:[%s2668_s23 + $0x28] sm:$0xff] }
  0x13   : > { %2227 = vmatprep.subr.mxu0 %v433_v4  ;;  %v2411_v23 = vtrunc.f32 %v2689_v17  ;;  %v2413_v29 = vtrunc.f32 %v2699_v24  ;;  %v2415_v35 = vtrunc.f32 %v2706_v31  ;;  %v2716_v38 = vld [vmem:[%s2668_s23 + $0x30] sm:$0xff]  ;;  %v2726_v45 = vld [vmem:[%s2668_s23 + $0x38] sm:$0xff]  ;;  %v2736_v52 = vld [vmem:[%s2668_s23 + $0x40] sm:$0xff] }
  0x14   : > { %2228 = vmatpush3.msra.mxu0 %v433_v4  ;;  %v2408_v12 = vcvt.f32.s32 %v2407_v8  ;;  %v2406_v13 = vcvt.f32.s32 %v2405_v9  ;;  %v2410_v22 = vcvt.f32.s32 %v2409_v14  ;;  %v2417_v42 = vtrunc.f32 %v2716_v38  ;;  %v2743_v58 = vld [vmem:[%s2668_s23 + $0x48] sm:$0xff]  ;;  %v2747_v63 = vld [vmem:[%s2668_s23 + $0x50] sm:$0xff]  ;;  %v2751_v4 = vld [vmem:[%s2668_s23 + $0x58] sm:$0xff] }
  0x15   : > { %2229 = vmatprep.subr.mxu0 %v432_v7  ;;  %v2412_v28 = vcvt.f32.s32 %v2411_v23  ;;  %v2414_v34 = vcvt.f32.s32 %v2413_v29  ;;  %v2416_v41 = vcvt.f32.s32 %v2415_v35  ;;  %v2419_v49 = vtrunc.f32 %v2726_v45  ;;  %v2763_v23 = vld [vmem:[%s2668_s23 + $0x70] sm:$0xff]  ;;  %v2767_v29 = vld [vmem:[%s2668_s23 + $0x78] sm:$0xff] }
  0x16   : > { %2230 = vmatpush3.msra.mxu0 %v432_v7  ;;  %v182_v15 = vadd.s32 8, %v2408_v12  ;;  %v181_v16 = vadd.s32 8, %v2406_v13  ;;  %v294_v20 = vadd.s32 16, %v2408_v12  ;;  %v293_v21 = vadd.s32 16, %v2406_v13  ;;  %v2755_v12 = vld [vmem:[%s2668_s23 + $0x60] sm:$0xff] }
  0x17   : > { %2231 = vmatprep.subr.mxu0 %v431_v11  ;;  %v295_v27 = vadd.s32 16, %v2410_v22  ;;  %v183_v30 = vadd.s32 8, %v2410_v22  ;;  %v296_v33 = vadd.s32 16, %v2412_v28  ;;  %v184_v37 = vadd.s32 8, %v2412_v28 }
  0x18   : > { %2232 = vmatpush3.msra.mxu0 %v431_v11  ;;  %201 = vperm.xlu1 %2453, %v182_v15   ;;  %v297_v40 = vadd.s32 16, %v2414_v34  ;;  %v185_v44 = vadd.s32 8, %v2414_v34  ;;  %v298_v47 = vadd.s32 16, %v2416_v41  ;;  %v2418_v48 = vcvt.f32.s32 %v2417_v42 }
  0x19   : > { %198 = vperm.xlu0 %2451, %v181_v16   ;;  %2233 = vmatprep.subr.mxu0 %v430_v18  ;;  %v186_v51 = vadd.s32 8, %v2416_v41  ;;  %v2420_v55 = vcvt.f32.s32 %v2419_v49  ;;  %v2421_v56 = vtrunc.f32 %v2736_v52  ;;  %v2423_v61 = vtrunc.f32 %v2743_v58 }
  0x1a   : > { %2234 = vmatpush3.msra.mxu0 %v430_v18  ;;  %v299_v54 = vadd.s32 16, %v2418_v48  ;;  %v187_v57 = vadd.s32 8, %v2418_v48  ;;  %v2425_v2 = vtrunc.f32 %v2747_v63  ;;  %v2427_v9 = vtrunc.f32 %v2751_v4  ;;  %v2759_v18 = vld [vmem:[%s2668_s23 + $0x68] sm:$0xff] }
  0x1b   : > { %2235 = vmatprep.subr.mxu0 %v429_v19  ;;  %v300_v59 = vadd.s32 16, %v2420_v55  ;;  %v2422_v60 = vcvt.f32.s32 %v2421_v56  ;;  %v188_v62 = vadd.s32 8, %v2420_v55  ;;  %v2429_v15 = vtrunc.f32 %v2755_v12 }
  0x1c   : > { %2454 = vset.pattern.permute.xlu1 %v2620_v25  ;;  %2236 = vmatpush3.msra.mxu0 %v429_v19  ;;  %v2426_v8 = vcvt.f32.s32 %v2425_v2  ;;  %v2428_v14 = vcvt.f32.s32 %v2427_v9  ;;  %v2621_v41 = vmov 2   ;;  %v2622_v42 = vmov 3  }
  0x1d   : > { %2452 = vset.pattern.permute.xlu0 %v2620_v25  ;;  %313 = vperm.xlu1 %2454, %v294_v20   ;;  %v301_v0 = vadd.s32 16, %v2422_v60  ;;  %v189_v3 = vadd.s32 8, %v2422_v60  ;;  %v2430_v20 = vcvt.f32.s32 %v2429_v15 }
  0x1e   : > { %310 = vperm.xlu0 %2452, %v293_v21   ;;  %2237 = vmatprep.subr.mxu0 %v428_v26  ;;  %v303_v13 = vadd.s32 16, %v2426_v8  ;;  %v191_v16 = vadd.s32 8, %v2426_v8  ;;  %v304_v19 = vadd.s32 16, %v2428_v14  ;;  %v2431_v21 = vtrunc.f32 %v2759_v18 }
  0x1f   : > { %2238 = vmatpush3.msra.mxu0 %v428_v26  ;;  %v192_v22 = vadd.s32 8, %v2428_v14  ;;  %v305_v25 = vadd.s32 16, %v2430_v20  ;;  %v193_v28 = vadd.s32 8, %v2430_v20 }
  0x20   : > { %2239 = vmatprep.subr.mxu0 %v427_v32  ;;  %v2432_v26 = vcvt.f32.s32 %v2431_v21 }
  0x21   : > { %2455 = vset.pattern.permute.xlu1 %v2619_v1  ;;  %2240 = vmatpush3.msra.mxu0 %v427_v32  ;;  %v2424_v1 = vcvt.f32.s32 %v2423_v61 }
  0x22   : > { %316 = vperm.xlu0 %2452, %v295_v27   ;;  %204 = vperm.xlu1 %2455, %v183_v30   ;;  %v2433_v27 = vtrunc.f32 %v2763_v23  ;;  %v306_v30 = vadd.s32 16, %v2432_v26  ;;  %v194_v34 = vadd.s32 8, %v2432_v26 }
  0x23   : > { %2241 = vmatprep.subr.mxu0 %v426_v36  ;;  %v302_v7 = vadd.s32 16, %v2424_v1  ;;  %v190_v11 = vadd.s32 8, %v2424_v1 }
  0x24   : > { %2242 = vmatpush3.msra.mxu0 %v426_v36  ;;  %v2434_v32 = vcvt.f32.s32 %v2433_v27 }
  0x25   : > { %2243 = vmatprep.subr.mxu0 %v425_v39 }
  0x26   : > { %319 = vperm.xlu0 %2452, %v296_v33   ;;  %207 = vperm.xlu1 %2455, %v184_v37   ;;  %v2435_v33 = vtrunc.f32 %v2767_v29  ;;  %v307_v35 = vadd.s32 16, %v2434_v32  ;;  %v195_v37 = vadd.s32 8, %v2434_v32 }
  0x27   : > { %2244 = vmatpush3.msra.mxu0 %v425_v39 }
  0x28   : > { %2245 = vmatprep.subr.mxu0 %v424_v43  ;;  %v2436_v36 = vcvt.f32.s32 %v2435_v33 }
  0x29   : > { %2246 = vmatpush3.msra.mxu0 %v424_v43  ;;  %v2623_v43 = vmov 4  }
  0x2a   : > { %322 = vperm.xlu0 %2452, %v297_v40   ;;  %210 = vperm.xlu1 %2455, %v185_v44   ;;  %v308_v39 = vadd.s32 16, %v2436_v36  ;;  %v196_v40 = vadd.s32 8, %v2436_v36  ;;  %v2624_v44 = vmov 0.0  }
  0x2b   : > { %2247 = vmatprep.subr.mxu0 %v423_v46 }
  0x2c   : > { %2248 = vmatpush3.msra.mxu0 %v423_v46 }
  0x2d   : > { %2249 = vmatprep.subr.mxu0 %v422_v50 }
  0x2e   : > { %325 = vperm.xlu0 %2452, %v298_v47   ;;  %2250 = vmatpush3.msra.mxu0 %v422_v50 }
  0x2f   : > { %213 = vperm.xlu1 %2455, %v186_v51   ;;  %2251 = vmatprep.subr.mxu0 %v421_v53 }
  0x30   : > { %2252 = vmatpush3.msra.mxu0 %v421_v53 }
  0x32   : > { %328 = vperm.xlu0 %2452, %v299_v54  }
  0x33   : > { %216 = vperm.xlu1 %2455, %v187_v57  }
  0x36   : > { %331 = vperm.xlu0 %2452, %v300_v59  }
  0x37   : > { %219 = vperm.xlu1 %2455, %v188_v62  }
  0x3a   : > { %334 = vperm.xlu0 %2452, %v301_v0  }
  0x3b   : > { %222 = vperm.xlu1 %2455, %v189_v3  }
  0x3e   : > { %337 = vperm.xlu0 %2452, %v302_v7  }
  0x3f   : > { %225 = vperm.xlu1 %2455, %v190_v11  }
  0x42   : > { %340 = vperm.xlu0 %2452, %v303_v13  }
  0x43   : > { %228 = vperm.xlu1 %2455, %v191_v16  }
  0x46   : > { %343 = vperm.xlu0 %2452, %v304_v19  }
  0x47   : > { %231 = vperm.xlu1 %2455, %v192_v22  }
  0x4a   : > { %346 = vperm.xlu0 %2452, %v305_v25  }
  0x4b   : > { %234 = vperm.xlu1 %2455, %v193_v28  }
  0x4e   : > { %349 = vperm.xlu0 %2452, %v306_v30  }
  0x4f   : > { %237 = vperm.xlu1 %2455, %v194_v34  }
  0x52   : > { %352 = vperm.xlu0 %2452, %v307_v35  }
  0x53   : > { %240 = vperm.xlu1 %2455, %v195_v37  }
  0x56   : > { %355 = vperm.xlu0 %2452, %v308_v39  }
  0x57   : > { %243 = vperm.xlu1 %2455, %v196_v40  }
  0x5a   : > { %2457 = vset.pattern.permute.xlu0 %v2621_v41 }
  0x5b   : > { %2456 = vset.pattern.permute.xlu1 %v2621_v41  ;;  %595 = vperm.xlu0 %2457, %v2671_v5  }
  0x5c   : > { %590 = vperm.xlu1 %2456, %v2674_v6  }
  0x5f   : > { %600 = vperm.xlu0 %2457, %v2682_v10  }
  0x60   : > { %2458 = vset.pattern.permute.xlu1 %v2622_v42 }
  0x61   : > { %706 = vperm.xlu1 %2458, %v2674_v6  }
  0x63   : > { %605 = vperm.xlu0 %2457, %v2689_v17  }
  0x65   : > { %710 = vperm.xlu1 %2458, %v2671_v5  }
  0x67   : > { %2462 = vset.pattern.permute.xlu0 %v2623_v43 }
  0x68   : > { %815 = vperm.xlu0 %2462, %v2682_v10  }
  0x69   : > { %2459 = vset.pattern.permute.xlu1 %v2623_v43 }
  0x6a   : > { %807 = vperm.xlu1 %2459, %v2674_v6  }
  0x6c   : > { %823 = vperm.xlu0 %2462, %v2699_v24  }
  0x6e   : > { %811 = vperm.xlu1 %2459, %v2671_v5   ;;  %v163_v5 = vlaneseq }
  0x70   : > { %831 = vperm.xlu0 %2462, %v2716_v38   ;;  %v2808_v6 = vand.u32 127, %v163_v5 }
  0x72   : > { %2460 = vset.pattern.permute.xlu1 %v2622_v42 }
  0x73   : > { %718 = vperm.xlu1 %2460, %v2689_v17  }
  0x74   : > { %839 = vperm.xlu0 %2462, %v2736_v52  }
  0x77   : > { %2461 = vset.pattern.permute.xlu1 %v2621_v41 }
  0x78   : > { %610 = vperm.xlu1 %2461, %v2699_v24   ;;  %847 = vperm.xlu0 %2462, %v2747_v63  }
  0x7c   : > { %615 = vperm.xlu1 %2461, %v2706_v31   ;;  %855 = vperm.xlu0 %2462, %v2755_v12  }
  0x80   : > { %2463 = vset.pattern.permute.xlu1 %v2623_v43  ;;  %2478 = vset.pattern.permute.xlu0 %v2622_v42 }
  0x81   : > { %819 = vperm.xlu1 %2463, %v2689_v17   ;;  %714 = vperm.xlu0 %2478, %v2682_v10  }
  0x85   : > { %2464 = vset.pattern.permute.xlu1 %v2622_v42  ;;  %722 = vperm.xlu0 %2478, %v2699_v24  }
  0x86   : > { %726 = vperm.xlu1 %2464, %v2706_v31  }
  0x89   : > { %730 = vperm.xlu0 %2478, %v2716_v38  }
  0x8a   : > { %2465 = vset.pattern.permute.xlu1 %v2621_v41 }
  0x8b   : > { %620 = vperm.xlu1 %2465, %v2716_v38  }
  0x8d   : > { %738 = vperm.xlu0 %2478, %v2736_v52  }
  0x8f   : > { %625 = vperm.xlu1 %2465, %v2726_v45  }
  0x91   : > { %746 = vperm.xlu0 %2478, %v2747_v63  }
  0x93   : > { %2466 = vset.pattern.permute.xlu1 %v2623_v43  ;;  %v202_v10 = vpop.permute.xlu1 %201 }
  0x94   : > { %v199_v17 = vpop.permute.xlu0 %198  ;;  %827 = vperm.xlu1 %2466, %v2706_v31   ;;  %vm246_vm0 = vcmp.eq.s32.totalorder %v2808_v6, %v202_v10 }
  0x95   : > { %754 = vperm.xlu0 %2478, %v2755_v12   ;;  %vm245_vm1 = vcmp.eq.s32.totalorder %v2808_v6, %v199_v17  ;;  %v2045_v31 = vsel %vm246_vm0, 1.0, %v2624_v44 }
  0x96   : > { %v2044_v47 = vsel %vm245_vm1, 1.0, %v2624_v44 }
  0x98   : > { %2467 = vset.pattern.permute.xlu1 %v2622_v42  ;;  %v314_v24 = vpop.permute.xlu1 %313 }
  0x99   : > { %v311_v38 = vpop.permute.xlu0 %310  ;;  %734 = vperm.xlu1 %2467, %v2726_v45   ;;  %762 = vperm.xlu0 %2478, %v2763_v23   ;;  %vm358_vm2 = vcmp.eq.s32.totalorder %v2808_v6, %v314_v24 }
  0x9a   : > { %vm357_vm3 = vcmp.eq.s32.totalorder %v2808_v6, %v311_v38  ;;  %v2061_v46 = vsel %vm358_vm2, 1.0, %v2624_v44 }
  0x9b   : > { %v2060_v48 = vsel %vm357_vm3, 1.0, %v2624_v44  ;;  %v406_v49 = vadd.f32 %v2061_v46, %v2045_v31 }
  0x9c   : > { %v405_v50 = vadd.f32 %v2060_v48, %v2044_v47 }
  0x9d   : > { %v317_v51 = vpop.permute.xlu0 %316  ;;  %2468 = vset.pattern.permute.xlu1 %v2621_v41  ;;  %2482 = vset.pattern.permute.xlu0 %v2623_v43  ;;  %v205_v53 = vpop.permute.xlu1 %204 }
  0x9e   : > { %vm359_vm4 = vcmp.eq.s32.totalorder %v2808_v6, %v317_v51  ;;  %2253 = vmatprep.mubr.f32.mxu0 %v405_v50  ;;  %630 = vperm.xlu1 %2468, %v2736_v52   ;;  %vm247_vm5 = vcmp.eq.s32.totalorder %v2808_v6, %v205_v53 }
  0x9f   : > { %v2062_v54 = vsel %vm359_vm4, 1.0, %v2624_v44  ;;  %2254 = vmatmul.mubr.f32.vlgmr.msra.gmra.mxu0 %v406_v49  ;;  %867 = vperm.xlu0 %2482, %v2767_v29   ;;  %v2046_v55 = vsel %vm247_vm5, 1.0, %v2624_v44 }
  0xa0   : > { %v407_v56 = vadd.f32 %v2062_v54, %v2046_v55 }
  0xa1   : > { %v320_v57 = vpop.permute.xlu0 %319  ;;  %v208_v59 = vpop.permute.xlu1 %207 }
  0xa2   : > { %vm360_vm6 = vcmp.eq.s32.totalorder %v2808_v6, %v320_v57  ;;  %635 = vperm.xlu1 %2468, %v2743_v58   ;;  %vm248_vm7 = vcmp.eq.s32.totalorder %v2808_v6, %v208_v59  ;;  %2256 = vmatprep.mubr.f32.mxu0 %v407_v56 }
  0xa3   : > { %v2063_v60 = vsel %vm360_vm6, 1.0, %v2624_v44  ;;  %v2047_v52 = vsel %vm248_vm7, 1.0, %v2624_v44 }
  0xa4   : > { %v408_v61 = vadd.f32 %v2063_v60, %v2047_v52 }
  0xa5   : > { %v323_v62 = vpop.permute.xlu0 %322  ;;  %v211_v0 = vpop.permute.xlu1 %210 }
  0xa6   : > { %vm361_vm8 = vcmp.eq.s32.totalorder %v2808_v6, %v323_v62  ;;  %2469 = vset.pattern.permute.xlu1 %v2623_v43  ;;  %vm249_vm9 = vcmp.eq.s32.totalorder %v2808_v6, %v211_v0  ;;  %2257 = vmatmul.mubr.f32.gmra.mxu0 %v408_v61 }
  0xa7   : > { %v2064_v1 = vsel %vm361_vm8, 1.0, %v2624_v44  ;;  %835 = vperm.xlu1 %2469, %v2726_v45   ;;  %v2048_v2 = vsel %vm249_vm9, 1.0, %v2624_v44 }
  0xa8   : > { %v409_v3 = vadd.f32 %v2064_v1, %v2048_v2 }
  0xa9   : > { %v326_v7 = vpop.permute.xlu0 %325 }
  0xaa   : > { %vm362_vm10 = vcmp.eq.s32.totalorder %v2808_v6, %v326_v7  ;;  %v214_v8 = vpop.permute.xlu1 %213  ;;  %2259 = vmatprep.mubr.f32.mxu0 %v409_v3  ;;  %v925_v3 = vld [vmem:[%s3735_s1 + $0x118] sm:$0xff] }
  0xab   : > { %v2065_v9 = vsel %vm362_vm10, 1.0, %v2624_v44  ;;  %vm250_vm11 = vcmp.eq.s32.totalorder %v2808_v6, %v214_v8  ;;  %2470 = vset.pattern.permute.xlu1 %v2622_v42  ;;  %2277 = vmatprep.subr.mxu1 %v925_v3 }
  0xac   : > { %v2049_v11 = vsel %vm250_vm11, 1.0, %v2624_v44  ;;  %742 = vperm.xlu1 %2470, %v2743_v58   ;;  %2278 = vmatpush3.msra.mxu1 %v925_v3 }
  0xad   : > { %v410_v13 = vadd.f32 %v2065_v9, %v2049_v11  ;;  %v329_v45 = vpop.permute.xlu0 %328 }
  0xae   : > { %vm363_vm12 = vcmp.eq.s32.totalorder %v2808_v6, %v329_v45  ;;  %v217_v14 = vpop.permute.xlu1 %216 }
  0xaf   : > { %v2066_v15 = vsel %vm363_vm12, 1.0, %v2624_v44  ;;  %vm251_vm13 = vcmp.eq.s32.totalorder %v2808_v6, %v217_v14  ;;  %2260 = vmatmul.mubr.f32.gmra.mxu0 %v410_v13 }
  0xb0   : > { %v2050_v16 = vsel %vm251_vm13, 1.0, %v2624_v44  ;;  %2471 = vset.pattern.permute.xlu1 %v2621_v41 }
  0xb1   : > { %v411_v19 = vadd.f32 %v2066_v15, %v2050_v16  ;;  %v332_v20 = vpop.permute.xlu0 %331  ;;  %640 = vperm.xlu1 %2471, %v2747_v63  }
  0xb2   : > { %vm364_vm14 = vcmp.eq.s32.totalorder %v2808_v6, %v332_v20  ;;  %v220_v21 = vpop.permute.xlu1 %219 }
  0xb3   : > { %v2067_v22 = vsel %vm364_vm14, 1.0, %v2624_v44  ;;  %vm252_vm15 = vcmp.eq.s32.totalorder %v2808_v6, %v220_v21  ;;  %2262 = vmatprep.mubr.f32.mxu0 %v411_v19 }
  0xb4   : > { %v2051_v25 = vsel %vm252_vm15, 1.0, %v2624_v44 }
  0xb5   : > { %v412_v26 = vadd.f32 %v2067_v22, %v2051_v25  ;;  %v335_v27 = vpop.permute.xlu0 %334  ;;  %645 = vperm.xlu1 %2471, %v2751_v4  }
  0xb6   : > { %vm365_vm0 = vcmp.eq.s32.totalorder %v2808_v6, %v335_v27  ;;  %v223_v28 = vpop.permute.xlu1 %222 }
  0xb7   : > { %v2068_v30 = vsel %vm365_vm0, 1.0, %v2624_v44  ;;  %vm253_vm1 = vcmp.eq.s32.totalorder %v2808_v6, %v223_v28  ;;  %2263 = vmatmul.mubr.f32.gmra.mxu0 %v412_v26  ;;  %vm931_vm0 = vcmask 261120  }
  0xb8   : > { %v2052_v63 = vsel %vm253_vm1, 1.0, %v2624_v44  ;;  %vm1510_vm1 = vcmp.lt.s32.totalorder %v2808_v6, 5 }
  0xb9   : > { %v413_v32 = vadd.f32 %v2068_v30, %v2052_v63  ;;  %v338_v33 = vpop.permute.xlu0 %337  ;;  %2472 = vset.pattern.permute.xlu1 %v2623_v43 }
  0xba   : > { %vm366_vm2 = vcmp.eq.s32.totalorder %v2808_v6, %v338_v33  ;;  %v226_v34 = vpop.permute.xlu1 %225  ;;  %843 = vperm.xlu1 %2472, %v2743_v58  }
  0xbb   : > { %v2069_v35 = vsel %vm366_vm2, 1.0, %v2624_v44  ;;  %vm254_vm3 = vcmp.eq.s32.totalorder %v2808_v6, %v226_v34  ;;  %2265 = vmatprep.mubr.f32.mxu0 %v413_v32  ;;  %vm1720_vm2 = vcmp.ge.s32.totalorder %v2808_v6, 5 }
  0xbc   : > { %v2053_v36 = vsel %vm254_vm3, 1.0, %v2624_v44  ;;  %vm1721_vm3 = vcmp.lt.s32.totalorder %v2808_v6, 12 }
  0xbd   : > { %v414_v37 = vadd.f32 %v2069_v35, %v2053_v36  ;;  %v341_v39 = vpop.permute.xlu0 %340 }
  0xbe   : > { %vm367_vm4 = vcmp.eq.s32.totalorder %v2808_v6, %v341_v39  ;;  %v229_v40 = vpop.permute.xlu1 %228  ;;  %2473 = vset.pattern.permute.xlu1 %v2622_v42 }
  0xbf   : > { %v2070_v5 = vsel %vm367_vm4, 1.0, %v2624_v44  ;;  %vm255_vm5 = vcmp.eq.s32.totalorder %v2808_v6, %v229_v40  ;;  %2266 = vmatmul.mubr.f32.gmra.mxu0 %v414_v37  ;;  %750 = vperm.xlu1 %2473, %v2751_v4   ;;  %v2964_v37 = vld [vmem:[%s3735_s1 + $0x143] ss:$0 sm:$0xff]  ;;  %v2971_v40 = vld [vmem:[%s3735_s1 + $0x140] ss:$0 sm:$0xff]  ;;  %vm3249_vm4 = vmand %vm1720_vm2, %vm1721_vm3 }
  0xc0   : > { %v2054_v58 = vsel %vm255_vm5, 1.0, %v2624_v44 }
  0xc1   : > { %v415_v10 = vadd.f32 %v2070_v5, %v2054_v58  ;;  %v344_v17 = vpop.permute.xlu0 %343  ;;  %v2976_v5 = vld [vmem:[%s3735_s1 + $0x141] ss:$0 sm:$0xff] }
  0xc2   : > { %vm368_vm6 = vcmp.eq.s32.totalorder %v2808_v6, %v344_v17  ;;  %v232_v24 = vpop.permute.xlu1 %231 }
  0xc3   : > { %v2071_v38 = vsel %vm368_vm6, 1.0, %v2624_v44  ;;  %vm256_vm7 = vcmp.eq.s32.totalorder %v2808_v6, %v232_v24  ;;  %2268 = vmatprep.mubr.f32.mxu0 %v415_v10  ;;  %2474 = vset.pattern.permute.xlu1 %v2621_v41 }
  0xc4   : > { %v2055_v31 = vsel %vm256_vm7, 1.0, %v2624_v44  ;;  %650 = vperm.xlu1 %2474, %v2755_v12  }
  0xc5   : > { %v416_v46 = vadd.f32 %v2071_v38, %v2055_v31  ;;  %v347_v47 = vpop.permute.xlu0 %346 }
  0xc6   : > { %vm369_vm8 = vcmp.eq.s32.totalorder %v2808_v6, %v347_v47  ;;  %v235_v48 = vpop.permute.xlu1 %234  ;;  %v2987_v47 = vld [vmem:[%s3735_s1 + $0x142] ss:$0 sm:$0xff] }
  0xc7   : > { %v2072_v49 = vsel %vm369_vm8, 1.0, %v2624_v44  ;;  %vm257_vm9 = vcmp.eq.s32.totalorder %v2808_v6, %v235_v48  ;;  %2269 = vmatmul.mubr.f32.gmra.mxu0 %v416_v46 }
  0xc8   : > { %v2056_v50 = vsel %vm257_vm9, 1.0, %v2624_v44  ;;  %655 = vperm.xlu1 %2474, %v2759_v18  }
  0xc9   : > { %v417_v51 = vadd.f32 %v2072_v49, %v2056_v50  ;;  %v350_v53 = vpop.permute.xlu0 %349 }
  0xca   : > { %vm370_vm10 = vcmp.eq.s32.totalorder %v2808_v6, %v350_v53  ;;  %v238_v54 = vpop.permute.xlu1 %237 }
  0xcb   : > { %v2073_v12 = vsel %vm370_vm10, 1.0, %v2624_v44  ;;  %vm258_vm11 = vcmp.eq.s32.totalorder %v2808_v6, %v238_v54  ;;  %2271 = vmatprep.mubr.f32.mxu0 %v417_v51 }
  0xcc   : > { %v2057_v55 = vsel %vm258_vm11, 1.0, %v2624_v44  ;;  %2475 = vset.pattern.permute.xlu1 %v2623_v43 }
  0xcd   : > { %v418_v56 = vadd.f32 %v2073_v12, %v2057_v55  ;;  %v353_v57 = vpop.permute.xlu0 %352  ;;  %851 = vperm.xlu1 %2475, %v2751_v4  }
  0xce   : > { %vm371_vm12 = vcmp.eq.s32.totalorder %v2808_v6, %v353_v57  ;;  %v241_v59 = vpop.permute.xlu1 %240 }
  0xcf   : > { %v2074_v60 = vsel %vm371_vm12, 1.0, %v2624_v44  ;;  %vm259_vm13 = vcmp.eq.s32.totalorder %v2808_v6, %v241_v59  ;;  %2272 = vmatmul.mubr.f32.gmra.mxu0 %v418_v56 }
  0xd0   : > { %v2058_v52 = vsel %vm259_vm13, 1.0, %v2624_v44 }
  0xd1   : > { %v419_v61 = vadd.f32 %v2074_v60, %v2058_v52  ;;  %v356_v62 = vpop.permute.xlu0 %355  ;;  %2476 = vset.pattern.permute.xlu1 %v2622_v42 }
  0xd2   : > { %vm372_vm14 = vcmp.eq.s32.totalorder %v2808_v6, %v356_v62  ;;  %v244_v0 = vpop.permute.xlu1 %243  ;;  %758 = vperm.xlu1 %2476, %v2759_v18  }
  0xd3   : > { %v2075_v4 = vsel %vm372_vm14, 1.0, %v2624_v44  ;;  %vm260_vm15 = vcmp.eq.s32.totalorder %v2808_v6, %v244_v0  ;;  %2274 = vmatprep.mubr.f32.mxu0 %v419_v61 }
  0xd4   : > { %v2059_v1 = vsel %vm260_vm15, 1.0, %v2624_v44 }
  0xd5   : > { %v420_v2 = vadd.f32 %v2075_v4, %v2059_v1 }
  0xd6   : > { %2477 = vset.pattern.permute.xlu1 %v2621_v41  ;;  %v924_v41 = vld [vmem:[%s3735_s1 + $0x110] sm:$0xff]  ;;  %v596_v19 = vpop.permute.xlu0 %595 }
  0xd7   : > { %2275 = vmatmul.mubr.f32.gmra.mxu0 %v420_v2  ;;  %660 = vperm.xlu1 %2477, %v2763_v23   ;;  %v673_v10 = vmul.f32 %v2971_v40, %v596_v19 }
  0xd8   : > { %2279 = vmatprep.subr.mxu1 %v924_v41 }
  0xd9   : > { %2280 = vmatpush3.msra.mxu1 %v924_v41 }
  0xda   : > { %v601_v21 = vpop.permute.xlu0 %600 }
  0xdb   : > { %665 = vperm.xlu1 %2477, %v2767_v29   ;;  %v674_v4 = vmul.f32 %v2971_v40, %v601_v21 }
  0xde   : > { %v606_v25 = vpop.permute.xlu0 %605 }
  0xdf   : > { %2479 = vset.pattern.permute.xlu1 %v2623_v43  ;;  %v675_v52 = vmul.f32 %v2971_v40, %v606_v25  ;;  %v1138_v25 = vld [vmem:[%s3735_s1 + $0xe8] sm:$0xff] }
  0xe0   : > { %859 = vperm.xlu1 %2479, %v2759_v18   ;;  %v923_v18 = vld [vmem:[%s3735_s1 + $0x108] sm:$0xff] }
  0xe1   : > { %2281 = vmatprep.subr.mxu1 %v923_v18 }
  0xe2   : > { %2282 = vmatpush3.msra.mxu1 %v923_v18 }
  0xe3   : > { %v816_v27 = vpop.permute.xlu0 %815 }
  0xe4   : > { %2480 = vset.pattern.permute.xlu1 %v2622_v42  ;;  %v591_v42 = vpop.permute.xlu1 %590  ;;  %v876_v19 = vmul.f32 %v2987_v47, %v816_v27  ;;  %v1137_v27 = vld [vmem:[%s3735_s1 + $0xe0] sm:$0xff] }
  0xe5   : > { %766 = vperm.xlu1 %2480, %v2767_v29   ;;  %v922_v29 = vld [vmem:[%s3735_s1 + $0x100] sm:$0xff]  ;;  %v672_v31 = vmul.f32 %v2971_v40, %v591_v42 }
  0xe6   : > { %2283 = vmatprep.subr.mxu1 %v922_v29 }
  0xe7   : > { %2284 = vmatpush3.msra.mxu1 %v922_v29  ;;  %v2947_v30 = vpop.permute.xlu0 %823 }
  0xe8   : > { %v707_v44 = vpop.permute.xlu1 %706 }
  0xe9   : > { %2481 = vset.pattern.permute.xlu1 %v2623_v43  ;;  %v773_v51 = vmul.f32 %v2976_v5, %v707_v44 }
  0xea   : > { %863 = vperm.xlu1 %2481, %v2763_v23   ;;  %v2932_v23 = vld [vmem:[%s3735_s1 + $0xf8] sm:$0xff] }
  0xeb   : > { %2309 = vmatprep.subr.mxu1 %v2932_v23  ;;  %v2951_v32 = vpop.permute.xlu0 %831 }
  0xec   : > { %v711_v7 = vpop.permute.xlu1 %710 }
  0xed   : > { %v774_v46 = vmul.f32 %v2976_v5, %v711_v7 }
  0xef   : > { %v2955_v34 = vpop.permute.xlu0 %839 }
  0xf0   : > { %v808_v8 = vpop.permute.xlu1 %807 }
  0xf1   : > { %v874_v55 = vmul.f32 %v2987_v47, %v808_v8  ;;  %v1139_v8 = vld [vmem:[%s3735_s1 + $0xf0] sm:$0xff] }
  0xf3   : > { %v2959_v36 = vpop.permute.xlu0 %847 }
  0xf4   : > { %v812_v9 = vpop.permute.xlu1 %811 }
  0xf5   : > { %v875_v12 = vmul.f32 %v2987_v47, %v812_v9 }
  0xf7   : > { %v2990_v50 = vpop.permute.xlu0 %855 }
  0xf8   : > { %v719_v11 = vpop.permute.xlu1 %718 }
  0xf9   : > { %v776_v0 = vmul.f32 %v2976_v5, %v719_v11 }
  0xfc   : > { %v2923_v13 = vpop.permute.xlu1 %610  ;;  %v715_v1 = vpop.permute.xlu0 %714 }
  0xfd   : > { %v775_v3 = vmul.f32 %v2976_v5, %v715_v1 }
 0x100   : > { %v2925_v45 = vpop.permute.xlu1 %615 }
 0x104   : > { %v820_v43 = vpop.permute.xlu1 %819 }
 0x105   : > { %v877_v9 = vmul.f32 %v2987_v47, %v820_v43 }
 0x108   : > { %v2927_v14 = vpop.permute.xlu1 %726 }
 0x10c   : > { %v2935_v15 = vpop.permute.xlu1 %620 }
 0x110   : > { %v2937_v16 = vpop.permute.xlu1 %625 }
 0x114   : > { %v2939_v20 = vpop.permute.xlu1 %827 }
 0x118   : > { %v2941_v22 = vpop.permute.xlu1 %734 }
 0x11c   : > { %v2943_v26 = vpop.permute.xlu1 %630 }
 0x120   : > { %v2945_v28 = vpop.permute.xlu1 %635 }
 0x124   : > { %v2949_v63 = vpop.permute.xlu1 %835 }
 0x128   : > { %v2953_v33 = vpop.permute.xlu1 %742 }
 0x12c   : > { %v2957_v35 = vpop.permute.xlu1 %640 }
 0x130   : > { %v2966_v39 = vpop.permute.xlu1 %645 }
 0x135   : > { %v2980_v38 = vpop.permute.xlu1 %843 }
 0x13a   : > { %v2995_v60 = vpop.permute.xlu1 %750 }
 0x13f   : > { %v3009_v11 = vpop.permute.xlu1 %650 }
 0x15f   : > { %v2255_v58 = vpop.f32.mrf.mxu0 }
 0x160   : > { %v514_v17 = vadd.f32 %v2255_v58, %v2964_v37 }
 0x161   : > { %v508_v24 = vpop.f32.mrf.mxu0 }
 0x162   : > { %v689_v48 = vadd.f32 %v673_v10, %v514_v17  ;;  %v509_v49 = vadd.f32 %v2964_v37, %v508_v24  ;;  %v677_v17 = vmul.f32 %v2971_v40, %v2925_v45 }
 0x164   : > { %v790_v53 = vadd.f32 %v774_v46, %v689_v48  ;;  %v688_v54 = vadd.f32 %v672_v31, %v509_v49  ;;  %v778_v46 = vmul.f32 %v2976_v5, %v2927_v14  ;;  %v1135_v14 = vld [vmem:[%s3735_s1 + $0xd0] sm:$0xff] }
 0x166   : > { %v789_v56 = vadd.f32 %v773_v51, %v688_v54  ;;  %v891_v57 = vadd.f32 %v875_v12, %v790_v53  ;;  %v2258_v59 = vpop.f32.mrf.mxu0  ;;  %v1136_v51 = vld [vmem:[%s3735_s1 + $0xd8] sm:$0xff]  ;;  %v723_v53 = vpop.permute.xlu0 %722 }
 0x167   : > { %v524_v61 = vadd.f32 %v2258_v59, %v2964_v37  ;;  %v3030_v12 = vpop.permute.xlu1 %655  ;;  %v878_v59 = vmul.f32 %v2987_v47, %v2947_v30  ;;  %v1133_v30 = vld [vmem:[%s3735_s1 + $0xc0] sm:$0xff] }
 0x168   : > { %v890_v62 = vadd.f32 %v874_v55, %v789_v56  ;;  %v518_v2 = vpop.f32.mrf.mxu0  ;;  %v907_v42 = vmax.f32 %v891_v57, 0.0  ;;  %v879_v57 = vmul.f32 %v2987_v47, %v2939_v20  ;;  %v679_v20 = vmul.f32 %v2971_v40, %v2937_v16 }
 0x169   : > { %v691_v41 = vadd.f32 %v675_v52, %v524_v61  ;;  %v519_v18 = vadd.f32 %v2964_v37, %v518_v2  ;;  %v1134_v61 = vld [vmem:[%s3735_s1 + $0xc8] sm:$0xff] }
 0x16a   : > { %v906_v29 = vmax.f32 %v890_v62, 0.0 }
 0x16b   : > { %v792_v44 = vadd.f32 %v776_v0, %v691_v41  ;;  %v690_v7 = vadd.f32 %v674_v4, %v519_v18  ;;  %v3045_v4 = vpop.permute.xlu1 %851  ;;  %v780_v18 = vmul.f32 %v2976_v5, %v2941_v22  ;;  %v1131_v22 = vld [vmem:[%s3735_s1 + $0xb0] sm:$0xff] }
 0x16c   : > { %2285 = vmatprep.mubr.msk.f32.mxu1 %vm931_vm0, %v906_v29 }
 0x16d   : > { %2286 = vmatmul.mubr.msk.f32.vlgmr.msra.gmra.mxu1 %vm931_vm0, %v907_v42  ;;  %v791_v21 = vadd.f32 %v775_v3, %v690_v7  ;;  %v893_v58 = vadd.f32 %v877_v9, %v792_v44  ;;  %v678_v3 = vmul.f32 %v2971_v40, %v2935_v15  ;;  %v1132_v44 = vld [vmem:[%s3735_s1 + $0xb8] sm:$0xff]  ;;  %v731_v7 = vpop.permute.xlu0 %730 }
 0x16e   : > { %2310 = vmatpush3.msra.mxu1 %v2932_v23  ;;  %v676_v23 = vmul.f32 %v2971_v40, %v2923_v13  ;;  %v777_v13 = vmul.f32 %v2976_v5, %v723_v53  ;;  %v779_v9 = vmul.f32 %v2976_v5, %v731_v7  ;;  %v1128_v53 = vld [vmem:[%s3735_s1 + $0x98] sm:$0xff] }
 0x16f   : > { %v2261_v10 = vpop.f32.mrf.mxu0  ;;  %2311 = vmatprep.subr.mxu1 %v1139_v8  ;;  %v892_v43 = vadd.f32 %v876_v19, %v791_v21  ;;  %v909_v54 = vmax.f32 %v893_v58, 0.0  ;;  %v881_v21 = vmul.f32 %v2987_v47, %v2949_v63  ;;  %v880_v58 = vmul.f32 %v2987_v47, %v2951_v32  ;;  %v1129_v32 = vld [vmem:[%s3735_s1 + $0xa0] sm:$0xff] }
 0x170   : > { %v534_v24 = vadd.f32 %v2261_v10, %v2964_v37  ;;  %2312 = vmatpush3.msra.mxu1 %v1139_v8  ;;  %v681_v63 = vmul.f32 %v2971_v40, %v2945_v28 }
 0x171   : > { %v528_v31 = vpop.f32.mrf.mxu0  ;;  %2313 = vmatprep.subr.mxu1 %v1138_v25  ;;  %v908_v48 = vmax.f32 %v892_v43, 0.0 }
 0x172   : > { %v693_v49 = vadd.f32 %v677_v17, %v534_v24  ;;  %v529_v45 = vadd.f32 %v2964_v37, %v528_v31  ;;  %2314 = vmatpush3.msra.mxu1 %v1138_v25  ;;  %v3069_v25 = vpop.permute.xlu1 %758  ;;  %v1130_v17 = vld [vmem:[%s3735_s1 + $0xa8] sm:$0xff]  ;;  %v680_v31 = vmul.f32 %v2971_v40, %v2943_v26 }
 0x173   : > { %2315 = vmatprep.subr.mxu1 %v1137_v27  ;;  %2288 = vmatprep.mubr.msk.f32.mxu1 %vm931_vm0, %v908_v48  ;;  %v782_v48 = vmul.f32 %v2976_v5, %v2953_v33  ;;  %v1127_v33 = vld [vmem:[%s3735_s1 + $0x90] sm:$0xff] }
 0x174   : > { %v794_v55 = vadd.f32 %v778_v46, %v693_v49  ;;  %v692_v56 = vadd.f32 %v676_v23, %v529_v45  ;;  %2316 = vmatpush3.msra.mxu1 %v1137_v27  ;;  %v739_v49 = vpop.permute.xlu0 %738 }
 0x175   : > { %2289 = vmatmul.mubr.msk.f32.gmra.mxu1 %vm931_vm0, %v909_v54  ;;  %2317 = vmatprep.subr.mxu1 %v1136_v51  ;;  %v781_v26 = vmul.f32 %v2976_v5, %v739_v49 }
 0x176   : > { %v793_v52 = vadd.f32 %v777_v13, %v692_v56  ;;  %2318 = vmatpush3.msra.mxu1 %v1136_v51  ;;  %v895_v62 = vadd.f32 %v879_v57, %v794_v55  ;;  %v3090_v13 = vpop.permute.xlu1 %660  ;;  %v882_v57 = vmul.f32 %v2987_v47, %v2955_v34  ;;  %v784_v34 = vmul.f32 %v2976_v5, %v2995_v60 }
 0x177   : > { %v2264_v0 = vpop.f32.mrf.mxu0  ;;  %2319 = vmatprep.subr.mxu1 %v1135_v14  ;;  %v884_v60 = vmul.f32 %v2987_v47, %v2959_v36 }
 0x178   : > { %v894_v1 = vadd.f32 %v878_v59, %v793_v52  ;;  %v544_v2 = vadd.f32 %v2264_v0, %v2964_v37  ;;  %2320 = vmatpush3.msra.mxu1 %v1135_v14  ;;  %v911_v8 = vmax.f32 %v895_v62, 0.0  ;;  %v883_v14 = vmul.f32 %v2987_v47, %v2980_v38  ;;  %v747_v62 = vpop.permute.xlu0 %746 }
 0x179   : > { %v538_v41 = vpop.f32.mrf.mxu0  ;;  %2321 = vmatprep.subr.mxu1 %v1134_v61  ;;  %v683_v0 = vmul.f32 %v2971_v40, %v2966_v39  ;;  %v682_v38 = vmul.f32 %v2971_v40, %v2957_v35 }
 0x17a   : > { %v910_v29 = vmax.f32 %v894_v1, 0.0  ;;  %v695_v42 = vadd.f32 %v679_v20, %v544_v2  ;;  %v539_v16 = vadd.f32 %v2964_v37, %v538_v41  ;;  %2322 = vmatpush3.msra.mxu1 %v1134_v61 }
 0x17b   : > { %2323 = vmatprep.subr.mxu1 %v1133_v30 }
 0x17c   : > { %v796_v15 = vadd.f32 %v780_v18, %v695_v42  ;;  %v694_v19 = vadd.f32 %v678_v3, %v539_v16  ;;  %2291 = vmatprep.mubr.msk.f32.mxu1 %vm931_vm0, %v910_v29  ;;  %2324 = vmatpush3.msra.mxu1 %v1133_v30  ;;  %v666_v30 = vpop.permute.xlu1 %665  ;;  %v783_v42 = vmul.f32 %v2976_v5, %v747_v62  ;;  %v755_v7 = vpop.permute.xlu0 %754 }
 0x17d   : > { %2292 = vmatmul.mubr.msk.f32.gmra.mxu1 %vm931_vm0, %v911_v8  ;;  %2325 = vmatprep.subr.mxu1 %v1132_v44  ;;  %v687_v49 = vmul.f32 %v2971_v40, %v666_v30  ;;  %v1307_v30 = vld [vmem:[%s3735_s1 + $0x120] sm:$0xff] }
 0x17e   : > { %v795_v10 = vadd.f32 %v779_v9, %v694_v19  ;;  %2326 = vmatpush3.msra.mxu1 %v1132_v44  ;;  %v897_v43 = vadd.f32 %v881_v21, %v796_v15  ;;  %v885_v44 = vmul.f32 %v2987_v47, %v3045_v4  ;;  %v685_v19 = vmul.f32 %v2971_v40, %v3030_v12 }
 0x17f   : > { %v2267_v24 = vpop.f32.mrf.mxu0  ;;  %2327 = vmatprep.subr.mxu1 %v1131_v22  ;;  %v785_v12 = vmul.f32 %v2976_v5, %v755_v7 }
 0x180   : > { %v896_v27 = vadd.f32 %v880_v58, %v795_v10  ;;  %v554_v23 = vadd.f32 %v2267_v24, %v2964_v37  ;;  %2328 = vmatpush3.msra.mxu1 %v1131_v22  ;;  %v913_v54 = vmax.f32 %v897_v43, 0.0  ;;  %v860_v35 = vpop.permute.xlu1 %859  ;;  %v684_v58 = vmul.f32 %v2971_v40, %v3009_v11 }
 0x181   : > { %v548_v46 = vpop.f32.mrf.mxu0  ;;  %2329 = vmatprep.subr.mxu1 %v1130_v17  ;;  %v786_v10 = vmul.f32 %v2976_v5, %v3069_v25  ;;  %v886_v11 = vmul.f32 %v2987_v47, %v2990_v50 }
 0x182   : > { %v912_v45 = vmax.f32 %v896_v27, 0.0  ;;  %v697_v51 = vadd.f32 %v681_v63, %v554_v23  ;;  %v549_v28 = vadd.f32 %v2964_v37, %v548_v46  ;;  %2330 = vmatpush3.msra.mxu1 %v1130_v17  ;;  %v887_v63 = vmul.f32 %v2987_v47, %v860_v35  ;;  %v763_v23 = vpop.permute.xlu0 %762 }
 0x183   : > { %2331 = vmatprep.subr.mxu1 %v1129_v32 }
 0x184   : > { %v798_v55 = vadd.f32 %v782_v48, %v697_v51  ;;  %v696_v56 = vadd.f32 %v680_v31, %v549_v28  ;;  %2294 = vmatprep.mubr.msk.f32.mxu1 %vm931_vm0, %v912_v45  ;;  %2332 = vmatpush3.msra.mxu1 %v1129_v32  ;;  %v767_v27 = vpop.permute.xlu1 %766 }
 0x185   : > { %2295 = vmatmul.mubr.msk.f32.gmra.mxu1 %vm931_vm0, %v913_v54  ;;  %2333 = vmatprep.subr.mxu1 %v1128_v53  ;;  %v788_v28 = vmul.f32 %v2976_v5, %v767_v27 }
 0x186   : > { %v797_v59 = vadd.f32 %v781_v26, %v696_v56  ;;  %2334 = vmatpush3.msra.mxu1 %v1128_v53  ;;  %v899_v52 = vadd.f32 %v883_v14, %v798_v55  ;;  %v868_v53 = vpop.permute.xlu0 %867  ;;  %v686_v55 = vmul.f32 %v2971_v40, %v3090_v13 }
 0x187   : > { %v2270_v61 = vpop.f32.mrf.mxu0  ;;  %2335 = vmatprep.subr.mxu1 %v1127_v33 }
 0x188   : > { %v898_v20 = vadd.f32 %v882_v57, %v797_v59  ;;  %v564_v1 = vadd.f32 %v2270_v61, %v2964_v37  ;;  %2336 = vmatpush3.msra.mxu1 %v1127_v33  ;;  %v915_v29 = vmax.f32 %v899_v52, 0.0  ;;  %v864_v26 = vpop.permute.xlu1 %863  ;;  %v889_v57 = vmul.f32 %v2987_v47, %v868_v53 }
 0x189   : > { %v558_v2 = vpop.f32.mrf.mxu0  ;;  %v787_v59 = vmul.f32 %v2976_v5, %v763_v23  ;;  %v888_v62 = vmul.f32 %v2987_v47, %v864_v26  ;;  %v1125_v5 = vld [vmem:[%s3735_s1 + $0x80] sm:$0xff]  ;;  %v1310_v47 = vld [vmem:[%s3735_s1 + $0x138] sm:$0xff] }
 0x18a   : > { %v914_v3 = vmax.f32 %v898_v20, 0.0  ;;  %v699_v41 = vadd.f32 %v683_v0, %v564_v1  ;;  %v559_v18 = vadd.f32 %v2964_v37, %v558_v2  ;;  %2365 = vmatprep.subr.mxu0 %v1310_v47  ;;  %v1308_v2 = vld [vmem:[%s3735_s1 + $0x128] sm:$0xff] }
 0x18b   : > { %2366 = vmatpush3.msra.mxu0 %v1310_v47 }
 0x18c   : > { %v800_v39 = vadd.f32 %v784_v34, %v699_v41  ;;  %v698_v16 = vadd.f32 %v682_v38, %v559_v18  ;;  %2297 = vmatprep.mubr.msk.f32.mxu1 %vm931_vm0, %v914_v3  ;;  %v1309_v38 = vld [vmem:[%s3735_s1 + $0x130] sm:$0xff]  ;;  %v2080_v3 = vld [vmem:[%s3735_s1 + $0x145] ss:$0 sm:$0xff] }
 0x18d   : > { %2298 = vmatmul.mubr.msk.f32.gmra.mxu1 %vm931_vm0, %v915_v29  ;;  %2367 = vmatprep.subr.mxu0 %v1309_v38 }
 0x18e   : > { %v799_v8 = vadd.f32 %v783_v42, %v698_v16  ;;  %v901_v9 = vadd.f32 %v885_v44, %v800_v39  ;;  %2368 = vmatpush3.msra.mxu0 %v1309_v38 }
 0x18f   : > { %v2273_v15 = vpop.f32.mrf.mxu0  ;;  %2369 = vmatprep.subr.mxu0 %v1308_v2 }
 0x190   : > { %v900_v22 = vadd.f32 %v884_v60, %v799_v8  ;;  %v574_v21 = vadd.f32 %v2273_v15, %v2964_v37  ;;  %v917_v24 = vmax.f32 %v901_v9, 0.0  ;;  %2370 = vmatpush3.msra.mxu0 %v1308_v2 }
 0x191   : > { %v568_v4 = vpop.f32.mrf.mxu0  ;;  %2371 = vmatprep.subr.mxu0 %v1307_v30 }
 0x192   : > { %v916_v17 = vmax.f32 %v900_v22, 0.0  ;;  %v701_v43 = vadd.f32 %v685_v19, %v574_v21  ;;  %v569_v36 = vadd.f32 %v2964_v37, %v568_v4  ;;  %2372 = vmatpush3.msra.mxu0 %v1307_v30 }
 0x194   : > { %v700_v32 = vadd.f32 %v684_v58, %v569_v36  ;;  %v802_v31 = vadd.f32 %v786_v10, %v701_v43  ;;  %2300 = vmatprep.mubr.msk.f32.mxu1 %vm931_vm0, %v916_v17 }
 0x195   : > { %2301 = vmatmul.mubr.msk.f32.gmra.mxu1 %vm931_vm0, %v917_v24 }
 0x196   : > { %v801_v25 = vadd.f32 %v785_v12, %v700_v32  ;;  %v903_v46 = vadd.f32 %v887_v63, %v802_v31 }
 0x197   : > { %v2276_v48 = vpop.f32.mrf.mxu0 }
 0x198   : > { %v902_v45 = vadd.f32 %v886_v11, %v801_v25  ;;  %v584_v51 = vadd.f32 %v2276_v48, %v2964_v37  ;;  %v919_v14 = vmax.f32 %v903_v46, 0.0  ;;  %v2097_v46 = vld [vmem:[%s3735_s1 + $0x144] ss:$0 sm:$0xff] }
 0x199   : > { %v578_v54 = vpop.f32.mrf.mxu0 }
 0x19a   : > { %v918_v56 = vmax.f32 %v902_v45, 0.0  ;;  %v703_v33 = vadd.f32 %v687_v49, %v584_v51  ;;  %v579_v50 = vadd.f32 %v2964_v37, %v578_v54  ;;  %v1126_v37 = vld [vmem:[%s3735_s1 + $0x88] sm:$0xff] }
 0x19b   : > { %2337 = vmatprep.subr.mxu1 %v1126_v37 }
 0x19c   : > { %v804_v52 = vadd.f32 %v788_v28, %v703_v33  ;;  %v702_v61 = vadd.f32 %v686_v55, %v579_v50  ;;  %2303 = vmatprep.mubr.msk.f32.mxu1 %vm931_vm0, %v918_v56  ;;  %2338 = vmatpush3.msra.mxu1 %v1126_v37 }
 0x19d   : > { %2304 = vmatmul.mubr.msk.f32.gmra.mxu1 %vm931_vm0, %v919_v14  ;;  %2339 = vmatprep.subr.mxu1 %v1125_v5 }
 0x19e   : > { %v803_v0 = vadd.f32 %v787_v59, %v702_v61  ;;  %v905_v20 = vadd.f32 %v889_v57, %v804_v52  ;;  %2340 = vmatpush3.msra.mxu1 %v1125_v5 }
 0x19f   : > { %2397 = vmatprep.subr.mxu1 %v1310_v47 }
 0x1a0   : > { %v904_v40 = vadd.f32 %v888_v62, %v803_v0  ;;  %v921_v1 = vmax.f32 %v905_v20, 0.0 }
 0x1a2   : > { %v920_v13 = vmax.f32 %v904_v40, 0.0 }
 0x1a4   : > { %2306 = vmatprep.mubr.msk.f32.mxu1 %vm931_vm0, %v920_v13 }
 0x1a5   : > { %2307 = vmatmul.mubr.msk.f32.gmra.mxu1 %vm931_vm0, %v921_v1 }
 0x22d   : > { %v2287_v34 = vpop.f32.mrf.mxu1 }
 0x22e   : > { %v3167_v29 = vadd.f32 %v2287_v34, %v2080_v3 }
 0x22f   : > { %v1046_v41 = vpop.f32.mrf.mxu1 }
 0x230   : > { %v3165_v18 = vadd.f32 %v2080_v3, %v1046_v41 }
 0x232   : > { %2341 = vmatprep.mubr.f32.mxu1 %v3165_v18 }
 0x233   : > { %2342 = vmatmul.mubr.f32.vlgmr.msra.gmra.mxu1 %v3167_v29 }
 0x234   : > { %2401 = vmatpush3.msra.mxu1 %v1310_v47 }
 0x235   : > { %v2290_v42 = vpop.f32.mrf.mxu1  ;;  %2398 = vmatprep.subr.mxu1 %v1309_v38 }
 0x236   : > { %2402 = vmatpush3.msra.mxu1 %v1309_v38  ;;  %v3173_v44 = vadd.f32 %v2290_v42, %v2080_v3 }
 0x237   : > { %v1056_v39 = vpop.f32.mrf.mxu1  ;;  %2399 = vmatprep.subr.mxu1 %v1308_v2 }
 0x238   : > { %v3171_v16 = vadd.f32 %v2080_v3, %v1056_v39  ;;  %2403 = vmatpush3.msra.mxu1 %v1308_v2 }
 0x239   : > { %2400 = vmatprep.subr.mxu1 %v1307_v30 }
 0x23a   : > { %2344 = vmatprep.mubr.f32.mxu1 %v3171_v16  ;;  %2404 = vmatpush3.msra.mxu1 %v1307_v30 }
 0x23b   : > { %2345 = vmatmul.mubr.f32.gmra.mxu1 %v3173_v44 }
 0x23d   : > { %v2293_v35 = vpop.f32.mrf.mxu1 }
 0x23e   : > { %v3179_v8 = vadd.f32 %v2293_v35, %v2080_v3 }
 0x23f   : > { %v1066_v60 = vpop.f32.mrf.mxu1 }
 0x240   : > { %v3177_v7 = vadd.f32 %v2080_v3, %v1066_v60 }
 0x242   : > { %2347 = vmatprep.mubr.f32.mxu1 %v3177_v7 }
 0x243   : > { %2348 = vmatmul.mubr.f32.gmra.mxu1 %v3179_v8 }
 0x245   : > { %v2296_v9 = vpop.f32.mrf.mxu1 }
 0x246   : > { %v3185_v22 = vadd.f32 %v2296_v9, %v2080_v3 }
 0x247   : > { %v1076_v15 = vpop.f32.mrf.mxu1 }
 0x248   : > { %v3183_v19 = vadd.f32 %v2080_v3, %v1076_v15 }
 0x24a   : > { %2350 = vmatprep.mubr.f32.mxu1 %v3183_v19 }
 0x24b   : > { %2351 = vmatmul.mubr.f32.gmra.mxu1 %v3185_v22 }
 0x24d   : > { %v2299_v21 = vpop.f32.mrf.mxu1 }
 0x24e   : > { %v3191_v10 = vadd.f32 %v2299_v21, %v2080_v3 }
 0x24f   : > { %v1086_v58 = vpop.f32.mrf.mxu1 }
 0x250   : > { %v3189_v4 = vadd.f32 %v2080_v3, %v1086_v58 }
 0x252   : > { %2353 = vmatprep.mubr.f32.mxu1 %v3189_v4 }
 0x253   : > { %2354 = vmatmul.mubr.f32.gmra.mxu1 %v3191_v10 }
 0x255   : > { %v2302_v17 = vpop.f32.mrf.mxu1 }
 0x256   : > { %v3197_v24 = vadd.f32 %v2302_v17, %v2080_v3 }
 0x257   : > { %v1096_v43 = vpop.f32.mrf.mxu1 }
 0x258   : > { %v3195_v36 = vadd.f32 %v2080_v3, %v1096_v43  ;;  %3755 = vst [vmem:[#allocation3_spill] sm:$0xff] %v3197_v24 }
 0x25a   : > { %3754 = vst [vmem:[#allocation2_spill] sm:$0xff] %v3195_v36  ;;  %2356 = vmatprep.mubr.f32.mxu1 %v3195_v36 }
 0x25b   : > { %2357 = vmatmul.mubr.f32.gmra.mxu1 %v3197_v24 }
 0x25d   : > { %v2305_v63 = vpop.f32.mrf.mxu1 }
 0x25e   : > { %v3203_v23 = vadd.f32 %v2305_v63, %v2080_v3 }
 0x25f   : > { %v1106_v27 = vpop.f32.mrf.mxu1 }
 0x260   : > { %v3201_v12 = vadd.f32 %v2080_v3, %v1106_v27  ;;  %3757 = vst [vmem:[#allocation5_spill] sm:$0xff] %v3203_v23 }
 0x262   : > { %3756 = vst [vmem:[#allocation4_spill] sm:$0xff] %v3201_v12  ;;  %2359 = vmatprep.mubr.f32.mxu1 %v3201_v12 }
 0x263   : > { %2360 = vmatmul.mubr.f32.gmra.mxu1 %v3203_v23 }
 0x265   : > { %v2308_v32 = vpop.f32.mrf.mxu1 }
 0x266   : > { %v3209_v25 = vadd.f32 %v2308_v32, %v2080_v3 }
 0x267   : > { %v1116_v31 = vpop.f32.mrf.mxu1 }
 0x268   : > { %v3207_v11 = vadd.f32 %v2080_v3, %v1116_v31  ;;  %3759 = vst [vmem:[#allocation7_spill] sm:$0xff] %v3209_v25 }
 0x26a   : > { %3758 = vst [vmem:[#allocation6_spill] sm:$0xff] %v3207_v11  ;;  %2362 = vmatprep.mubr.f32.mxu1 %v3207_v11 }
 0x26b   : > { %2363 = vmatmul.mubr.f32.gmra.mxu1 %v3209_v25 }
 0x2f3   : > { %v2343_v48 = vpop.f32.mrf.mxu1 }
 0x2f4   : > { %v1218_v49 = vadd.f32 %v2343_v48, %v2097_v46 }
 0x2f5   : > { %v1212_v45 = vpop.f32.mrf.mxu1 }
 0x2f6   : > { %v1213_v51 = vadd.f32 %v2097_v46, %v1212_v45  ;;  %v1292_v53 = vmax.f32 %v1218_v49, 0.0  ;;  %v3235_v45 = vld [vmem:[%s3735_s1 + $0x146] ss:$0 sm:$0xff] }
 0x2f8   : > { %v1291_v28 = vmax.f32 %v1213_v51, 0.0 }
 0x2fa   : > { %2373 = vmatprep.mubr.msk.f32.mxu0 %vm931_vm0, %v1291_v28 }
 0x2fb   : > { %v2346_v54 = vpop.f32.mrf.mxu1  ;;  %2374 = vmatmul.mubr.msk.f32.vlgmr.msra.gmra.mxu0 %vm931_vm0, %v1292_v53 }
 0x2fc   : > { %v1228_v26 = vadd.f32 %v2346_v54, %v2097_v46 }
 0x2fd   : > { %v1222_v55 = vpop.f32.mrf.mxu1 }
 0x2fe   : > { %v1223_v56 = vadd.f32 %v2097_v46, %v1222_v55  ;;  %v1294_v50 = vmax.f32 %v1228_v26, 0.0 }
 0x300   : > { %v1293_v33 = vmax.f32 %v1223_v56, 0.0 }
 0x302   : > { %2376 = vmatprep.mubr.msk.f32.mxu0 %vm931_vm0, %v1293_v33 }
 0x303   : > { %v2349_v14 = vpop.f32.mrf.mxu1  ;;  %2377 = vmatmul.mubr.msk.f32.gmra.mxu0 %vm931_vm0, %v1294_v50 }
 0x304   : > { %v1238_v57 = vadd.f32 %v2349_v14, %v2097_v46 }
 0x305   : > { %v1232_v59 = vpop.f32.mrf.mxu1 }
 0x306   : > { %v1233_v52 = vadd.f32 %v2097_v46, %v1232_v59  ;;  %v1296_v62 = vmax.f32 %v1238_v57, 0.0 }
 0x308   : > { %v1295_v61 = vmax.f32 %v1233_v52, 0.0 }
 0x30a   : > { %2379 = vmatprep.mubr.msk.f32.mxu0 %vm931_vm0, %v1295_v61 }
 0x30b   : > { %v2352_v0 = vpop.f32.mrf.mxu1  ;;  %2380 = vmatmul.mubr.msk.f32.gmra.mxu0 %vm931_vm0, %v1296_v62 }
 0x30c   : > { %v1248_v20 = vadd.f32 %v2352_v0, %v2097_v46 }
 0x30d   : > { %v1242_v40 = vpop.f32.mrf.mxu1 }
 0x30e   : > { %v1243_v13 = vadd.f32 %v2097_v46, %v1242_v40  ;;  %v1298_v37 = vmax.f32 %v1248_v20, 0.0 }
 0x310   : > { %v1297_v1 = vmax.f32 %v1243_v13, 0.0 }
 0x312   : > { %2382 = vmatprep.mubr.msk.f32.mxu0 %vm931_vm0, %v1297_v1 }
 0x313   : > { %v2355_v5 = vpop.f32.mrf.mxu1  ;;  %2383 = vmatmul.mubr.msk.f32.gmra.mxu0 %vm931_vm0, %v1298_v37 }
 0x314   : > { %v1258_v47 = vadd.f32 %v2355_v5, %v2097_v46 }
 0x315   : > { %v1252_v38 = vpop.f32.mrf.mxu1 }
 0x316   : > { %v1253_v2 = vadd.f32 %v2097_v46, %v1252_v38  ;;  %v1300_v34 = vmax.f32 %v1258_v47, 0.0 }
 0x318   : > { %v1299_v30 = vmax.f32 %v1253_v2, 0.0 }
 0x31a   : > { %2385 = vmatprep.mubr.msk.f32.mxu0 %vm931_vm0, %v1299_v30 }
 0x31b   : > { %v2358_v3 = vpop.f32.mrf.mxu1  ;;  %2386 = vmatmul.mubr.msk.f32.gmra.mxu0 %vm931_vm0, %v1300_v34 }
 0x31c   : > { %v1268_v41 = vadd.f32 %v2358_v3, %v2097_v46 }
 0x31d   : > { %v1262_v42 = vpop.f32.mrf.mxu1 }
 0x31e   : > { %v1263_v39 = vadd.f32 %v2097_v46, %v1262_v42  ;;  %v1302_v60 = vmax.f32 %v1268_v41, 0.0 }
 0x320   : > { %v1301_v35 = vmax.f32 %v1263_v39, 0.0 }
 0x322   : > { %2388 = vmatprep.mubr.msk.f32.mxu1 %vm931_vm0, %v1301_v35 }
 0x323   : > { %v2361_v9 = vpop.f32.mrf.mxu1  ;;  %2389 = vmatmul.mubr.msk.f32.vlgmr.msra.gmra.mxu1 %vm931_vm0, %v1302_v60 }
 0x324   : > { %v1278_v15 = vadd.f32 %v2361_v9, %v2097_v46 }
 0x325   : > { %v1272_v21 = vpop.f32.mrf.mxu1 }
 0x326   : > { %v1273_v58 = vadd.f32 %v2097_v46, %v1272_v21  ;;  %v1304_v43 = vmax.f32 %v1278_v15, 0.0 }
 0x328   : > { %v1303_v17 = vmax.f32 %v1273_v58, 0.0 }
 0x32a   : > { %2391 = vmatprep.mubr.msk.f32.mxu1 %vm931_vm0, %v1303_v17 }
 0x32b   : > { %v2364_v63 = vpop.f32.mrf.mxu1  ;;  %2392 = vmatmul.mubr.msk.f32.gmra.mxu1 %vm931_vm0, %v1304_v43 }
 0x32c   : > { %v1288_v27 = vadd.f32 %v2364_v63, %v2097_v46 }
 0x32d   : > { %v1282_v32 = vpop.f32.mrf.mxu1 }
 0x32e   : > { %v1283_v31 = vadd.f32 %v2097_v46, %v1282_v32  ;;  %v1306_v49 = vmax.f32 %v1288_v27, 0.0 }
 0x330   : > { %v1305_v48 = vmax.f32 %v1283_v31, 0.0 }
 0x332   : > { %2394 = vmatprep.mubr.msk.f32.mxu1 %vm931_vm0, %v1305_v48 }
 0x333   : > { %2395 = vmatmul.mubr.msk.f32.gmra.mxu1 %vm931_vm0, %v1306_v49 }
 0x3bb   : > { %v2375_v51 = vpop.f32.mrf.mxu0 }
 0x3bc   : > { %v3239_v28 = vadd.f32 %v2375_v51, %v3235_v45 }
 0x3bd   : > { %v1430_v46 = vpop.f32.mrf.mxu0 }
 0x3be   : > { %v3244_v53 = vadd.f32 %v3235_v45, %v1430_v46  ;;  %v1513_v54 = vsel %vm1510_vm1, %v3239_v28, -inf  ;;  %v1724_v56 = vsel %vm3249_vm4, %v3239_v28, -inf }
 0x3bf   : > { %1530 = vmax.xlane.f32.xlu0 %v1513_v54 }
 0x3c0   : > { %v1512_v55 = vsel %vm1510_vm1, %v3244_v53, -inf  ;;  %v1723_v14 = vsel %vm3249_vm4, %v3244_v53, -inf }
 0x3c1   : > { %1528 = vmax.xlane.f32.xlu1 %v1512_v55 }
 0x3c3   : > { %1741 = vmax.xlane.f32.xlu0 %v1724_v56  ;;  %v2378_v33 = vpop.f32.mrf.mxu0 }
 0x3c4   : > { %v3260_v50 = vadd.f32 %v2378_v33, %v3235_v45 }
 0x3c5   : > { %v1440_v57 = vpop.f32.mrf.mxu0  ;;  %1739 = vmax.xlane.f32.xlu1 %v1723_v14 }
 0x3c6   : > { %v3266_v59 = vadd.f32 %v3235_v45, %v1440_v57  ;;  %v1515_v52 = vsel %vm1510_vm1, %v3260_v50, -inf  ;;  %v1726_v62 = vsel %vm3249_vm4, %v3260_v50, -inf }
 0x3c7   : > { %1534 = vmax.xlane.f32.xlu0 %v1515_v52 }
 0x3c8   : > { %v1514_v61 = vsel %vm1510_vm1, %v3266_v59, -inf  ;;  %v1725_v40 = vsel %vm3249_vm4, %v3266_v59, -inf }
 0x3c9   : > { %1532 = vmax.xlane.f32.xlu1 %v1514_v61 }
 0x3cb   : > { %1745 = vmax.xlane.f32.xlu0 %v1726_v62  ;;  %v2381_v0 = vpop.f32.mrf.mxu0 }
 0x3cc   : > { %v3278_v20 = vadd.f32 %v2381_v0, %v3235_v45 }
 0x3cd   : > { %v1450_v13 = vpop.f32.mrf.mxu0  ;;  %1743 = vmax.xlane.f32.xlu1 %v1725_v40 }
 0x3ce   : > { %v3284_v1 = vadd.f32 %v3235_v45, %v1450_v13  ;;  %v1517_v37 = vsel %vm1510_vm1, %v3278_v20, -inf  ;;  %v1728_v47 = vsel %vm3249_vm4, %v3278_v20, -inf }
 0x3cf   : > { %1538 = vmax.xlane.f32.xlu0 %v1517_v37 }
 0x3d0   : > { %v1516_v5 = vsel %vm1510_vm1, %v3284_v1, -inf  ;;  %v1727_v30 = vsel %vm3249_vm4, %v3284_v1, -inf }
 0x3d1   : > { %1536 = vmax.xlane.f32.xlu1 %v1516_v5 }
 0x3d3   : > { %1749 = vmax.xlane.f32.xlu0 %v1728_v47  ;;  %v2384_v38 = vpop.f32.mrf.mxu0 }
 0x3d4   : > { %v3296_v2 = vadd.f32 %v2384_v38, %v3235_v45 }
 0x3d5   : > { %v1460_v34 = vpop.f32.mrf.mxu0  ;;  %1747 = vmax.xlane.f32.xlu1 %v1727_v30 }
 0x3d6   : > { %v3302_v3 = vadd.f32 %v3235_v45, %v1460_v34  ;;  %v1519_v41 = vsel %vm1510_vm1, %v3296_v2, -inf  ;;  %v1730_v39 = vsel %vm3249_vm4, %v3296_v2, -inf }
 0x3d7   : > { %1542 = vmax.xlane.f32.xlu0 %v1519_v41 }
 0x3d8   : > { %v1518_v42 = vsel %vm1510_vm1, %v3302_v3, -inf  ;;  %v1729_v9 = vsel %vm3249_vm4, %v3302_v3, -inf }
 0x3d9   : > { %1540 = vmax.xlane.f32.xlu1 %v1518_v42 }
 0x3db   : > { %1753 = vmax.xlane.f32.xlu0 %v1730_v39  ;;  %v2387_v35 = vpop.f32.mrf.mxu0 }
 0x3dc   : > { %v3314_v60 = vadd.f32 %v2387_v35, %v3235_v45 }
 0x3dd   : > { %v1470_v15 = vpop.f32.mrf.mxu0  ;;  %1751 = vmax.xlane.f32.xlu1 %v1729_v9 }
 0x3de   : > { %v3320_v21 = vadd.f32 %v3235_v45, %v1470_v15  ;;  %v1521_v58 = vsel %vm1510_vm1, %v3314_v60, -inf  ;;  %v1732_v43 = vsel %vm3249_vm4, %v3314_v60, -inf }
 0x3df   : > { %1546 = vmax.xlane.f32.xlu0 %v1521_v58 }
 0x3e0   : > { %v1520_v17 = vsel %vm1510_vm1, %v3320_v21, -inf  ;;  %v1731_v32 = vsel %vm3249_vm4, %v3320_v21, -inf }
 0x3e1   : > { %1544 = vmax.xlane.f32.xlu1 %v1520_v17 }
 0x3e3   : > { %1757 = vmax.xlane.f32.xlu0 %v1732_v43  ;;  %v2390_v63 = vpop.f32.mrf.mxu1 }
 0x3e4   : > { %v3332_v27 = vadd.f32 %v2390_v63, %v3235_v45 }
 0x3e5   : > { %1755 = vmax.xlane.f32.xlu1 %v1731_v32  ;;  %v1480_v31 = vpop.f32.mrf.mxu1 }
 0x3e6   : > { %v3338_v48 = vadd.f32 %v3235_v45, %v1480_v31  ;;  %v1523_v49 = vsel %vm1510_vm1, %v3332_v27, -inf  ;;  %v1734_v46 = vsel %vm3249_vm4, %v3332_v27, -inf }
 0x3e7   : > { %1550 = vmax.xlane.f32.xlu0 %v1523_v49 }
 0x3e8   : > { %3762 = vst [vmem:[#allocation8_spill] sm:$0xff] %v3338_v48  ;;  %v1522_v51 = vsel %vm1510_vm1, %v3338_v48, -inf  ;;  %v1733_v56 = vsel %vm3249_vm4, %v3338_v48, -inf }
 0x3e9   : > { %1548 = vmax.xlane.f32.xlu1 %v1522_v51 }
 0x3eb   : > { %1761 = vmax.xlane.f32.xlu0 %v1734_v46  ;;  %v2393_v54 = vpop.f32.mrf.mxu1 }
 0x3ec   : > { %v3350_v55 = vadd.f32 %v2393_v54, %v3235_v45 }
 0x3ed   : > { %v1490_v33 = vpop.f32.mrf.mxu1  ;;  %1759 = vmax.xlane.f32.xlu1 %v1733_v56 }
 0x3ee   : > { %3763 = vst [vmem:[#allocation9_spill] sm:$0xff] %v3350_v55  ;;  %v3356_v14 = vadd.f32 %v3235_v45, %v1490_v33  ;;  %v1525_v57 = vsel %vm1510_vm1, %v3350_v55, -inf  ;;  %v1736_v61 = vsel %vm3249_vm4, %v3350_v55, -inf }
 0x3ef   : > { %1554 = vmax.xlane.f32.xlu0 %v1525_v57 }
 0x3f0   : > { %3764 = vst [vmem:[#allocation10_spill] sm:$0xff] %v3356_v14  ;;  %v1524_v52 = vsel %vm1510_vm1, %v3356_v14, -inf  ;;  %v1735_v40 = vsel %vm3249_vm4, %v3356_v14, -inf }
 0x3f1   : > { %1552 = vmax.xlane.f32.xlu1 %v1524_v52 }
 0x3f3   : > { %1765 = vmax.xlane.f32.xlu0 %v1736_v61  ;;  %v2396_v62 = vpop.f32.mrf.mxu1 }
 0x3f4   : > { %v3368_v0 = vadd.f32 %v2396_v62, %v3235_v45 }
 0x3f5   : > { %1763 = vmax.xlane.f32.xlu1 %v1735_v40  ;;  %v1500_v13 = vpop.f32.mrf.mxu1 }
 0x3f6   : > { %3765 = vst [vmem:[#allocation11_spill] sm:$0xff] %v3368_v0  ;;  %v3374_v37 = vadd.f32 %v3235_v45, %v1500_v13  ;;  %v1527_v5 = vsel %vm1510_vm1, %v3368_v0, -inf  ;;  %v1738_v38 = vsel %vm3249_vm4, %v3368_v0, -inf }
 0x3f7   : > { %1558 = vmax.xlane.f32.xlu0 %v1527_v5 }
 0x3f8   : > { %3766 = vst [vmem:[#allocation12_spill] sm:$0xff] %v3374_v37  ;;  %v1526_v47 = vsel %vm1510_vm1, %v3374_v37, -inf  ;;  %v1737_v45 = vsel %vm3249_vm4, %v3374_v37, -inf }
 0x3f9   : > { %1556 = vmax.xlane.f32.xlu1 %v1526_v47 }
 0x3fb   : > { %1769 = vmax.xlane.f32.xlu0 %v1738_v38 }
 0x3fd   : > { %1767 = vmax.xlane.f32.xlu1 %v1737_v45 }
 0x448   : > { %v3388_v30 = vpop.xlane.xlu0 %1530 }
 0x449   : > { %v1561_v34 = vsub.f32 %v3239_v28, %v3388_v30 }
 0x44a   : > { %v3392_v41 = vpop.xlane.xlu1 %1528 }
 0x44b   : > { %v1577_v42 = vsel %vm1510_vm1, %v1561_v34, -inf  ;;  %v1560_v39 = vsub.f32 %v3244_v53, %v3392_v41 }
 0x44c   : > { %v1594_v35 = vmul.f32 1.442695, %v1577_v42  ;;  %v3398_v9 = vpop.xlane.xlu0 %1741 }
 0x44d   : > { %v1576_v15 = vsel %vm1510_vm1, %v1560_v39, -inf  ;;  %v1772_v58 = vsub.f32 %v3239_v28, %v3398_v9 }
 0x44e   : > { %2483 = vpow2.f32 %v1594_v35  ;;  %v1592_v17 = vmul.f32 1.442695, %v1576_v15  ;;  %v3404_v43 = vpop.xlane.xlu1 %1739 }
 0x44f   : > { %v1788_v63 = vsel %vm3249_vm4, %v1772_v58, -inf  ;;  %v1771_v32 = vsub.f32 %v3244_v53, %v3404_v43 }
 0x450   : > { %2485 = vpow2.f32 %v1592_v17  ;;  %v1805_v31 = vmul.f32 1.442695, %v1788_v63  ;;  %v3410_v49 = vpop.xlane.xlu0 %1534 }
 0x451   : > { %v1787_v51 = vsel %vm3249_vm4, %v1771_v32, -inf  ;;  %v1563_v46 = vsub.f32 %v3260_v50, %v3410_v49 }
 0x452   : > { %2487 = vpow2.f32 %v1805_v31  ;;  %v1803_v54 = vmul.f32 1.442695, %v1787_v51  ;;  %v3416_v56 = vpop.xlane.xlu1 %1532 }
 0x453   : > { %v1579_v33 = vsel %vm1510_vm1, %v1563_v46, -inf  ;;  %v1562_v57 = vsub.f32 %v3266_v59, %v3416_v56 }
 0x454   : > { %2489 = vpow2.f32 %v1803_v54  ;;  %v1598_v52 = vmul.f32 1.442695, %v1579_v33  ;;  %v3422_v61 = vpop.xlane.xlu0 %1745 }
 0x455   : > { %v1578_v62 = vsel %vm1510_vm1, %v1562_v57, -inf  ;;  %v1774_v40 = vsub.f32 %v3260_v50, %v3422_v61 }
 0x456   : > { %2491 = vpow2.f32 %v1598_v52  ;;  %v1596_v13 = vmul.f32 1.442695, %v1578_v62  ;;  %v3428_v5 = vpop.xlane.xlu1 %1743 }
 0x457   : > { %v1790_v47 = vsel %vm3249_vm4, %v1774_v40, -inf  ;;  %v1773_v38 = vsub.f32 %v3266_v59, %v3428_v5 }
 0x458   : > { %2493 = vpow2.f32 %v1596_v13  ;;  %v1809_v45 = vmul.f32 1.442695, %v1790_v47  ;;  %v3434_v34 = vpop.xlane.xlu0 %1538 }
 0x459   : > { %v1789_v42 = vsel %vm3249_vm4, %v1773_v38, -inf  ;;  %v1565_v39 = vsub.f32 %v3278_v20, %v3434_v34 }
 0x45a   : > { %2495 = vpow2.f32 %v1809_v45  ;;  %v1807_v35 = vmul.f32 1.442695, %v1789_v42  ;;  %v3440_v15 = vpop.xlane.xlu1 %1536 }
 0x45b   : > { %v2484_v58 = vpop.eup %2483  ;;  %v1581_v17 = vsel %vm1510_vm1, %v1565_v39, -inf  ;;  %v1564_v63 = vsub.f32 %v3284_v1, %v3440_v15 }
 0x45c   : > { %2497 = vpow2.f32 %v1807_v35  ;;  %v1602_v32 = vmul.f32 1.442695, %v1581_v17  ;;  %v3446_v31 = vpop.xlane.xlu0 %1749  ;;  %1626 = vadd.xlane.f32.xlu0 %v2484_v58 }
 0x45d   : > { %v2486_v51 = vpop.eup %2485  ;;  %v1580_v46 = vsel %vm1510_vm1, %v1564_v63, -inf  ;;  %v1776_v54 = vsub.f32 %v3278_v20, %v3446_v31 }
 0x45e   : > { %2499 = vpow2.f32 %v1602_v32  ;;  %v1600_v33 = vmul.f32 1.442695, %v1580_v46  ;;  %v3452_v57 = vpop.xlane.xlu1 %1747  ;;  %1624 = vadd.xlane.f32.xlu1 %v2486_v51 }
 0x45f   : > { %v2488_v52 = vpop.eup %2487  ;;  %v1792_v62 = vsel %vm3249_vm4, %v1776_v54, -inf  ;;  %v1775_v40 = vsub.f32 %v3284_v1, %v3452_v57 }
 0x460   : > { %2501 = vpow2.f32 %v1600_v33  ;;  %v1813_v13 = vmul.f32 1.442695, %v1792_v62  ;;  %v3458_v47 = vpop.xlane.xlu0 %1542  ;;  %1837 = vadd.xlane.f32.xlu0 %v2488_v52 }
 0x461   : > { %v2490_v38 = vpop.eup %2489  ;;  %v1791_v45 = vsel %vm3249_vm4, %v1775_v40, -inf  ;;  %v1567_v42 = vsub.f32 %v3296_v2, %v3458_v47 }
 0x462   : > { %2503 = vpow2.f32 %v1813_v13  ;;  %v1811_v39 = vmul.f32 1.442695, %v1791_v45  ;;  %v3464_v35 = vpop.xlane.xlu1 %1540  ;;  %1835 = vadd.xlane.f32.xlu1 %v2490_v38 }
 0x463   : > { %v2492_v58 = vpop.eup %2491  ;;  %v1583_v17 = vsel %vm1510_vm1, %v1567_v42, -inf  ;;  %v1566_v63 = vsub.f32 %v3302_v3, %v3464_v35 }
 0x464   : > { %2505 = vpow2.f32 %v1811_v39  ;;  %v1606_v32 = vmul.f32 1.442695, %v1583_v17  ;;  %v3470_v51 = vpop.xlane.xlu0 %1753  ;;  %1630 = vadd.xlane.f32.xlu0 %v2492_v58 }
 0x465   : > { %v2494_v46 = vpop.eup %2493  ;;  %v1582_v54 = vsel %vm1510_vm1, %v1566_v63, -inf  ;;  %v1778_v33 = vsub.f32 %v3296_v2, %v3470_v51 }
 0x466   : > { %2507 = vpow2.f32 %v1606_v32  ;;  %v1604_v52 = vmul.f32 1.442695, %v1582_v54  ;;  %v3476_v62 = vpop.xlane.xlu1 %1751  ;;  %1628 = vadd.xlane.f32.xlu1 %v2494_v46 }
 0x467   : > { %v2496_v40 = vpop.eup %2495  ;;  %v1794_v13 = vsel %vm3249_vm4, %v1778_v33, -inf  ;;  %v1777_v38 = vsub.f32 %v3302_v3, %v3476_v62 }
 0x468   : > { %2509 = vpow2.f32 %v1604_v52  ;;  %v1817_v45 = vmul.f32 1.442695, %v1794_v13  ;;  %v3482_v42 = vpop.xlane.xlu0 %1546  ;;  %1841 = vadd.xlane.f32.xlu0 %v2496_v40 }
 0x469   : > { %v2498_v39 = vpop.eup %2497  ;;  %v1793_v58 = vsel %vm3249_vm4, %v1777_v38, -inf  ;;  %v1569_v17 = vsub.f32 %v3314_v60, %v3482_v42 }
 0x46a   : > { %2511 = vpow2.f32 %v1817_v45  ;;  %v1815_v63 = vmul.f32 1.442695, %v1793_v58  ;;  %v3488_v32 = vpop.xlane.xlu1 %1544  ;;  %1839 = vadd.xlane.f32.xlu1 %v2498_v39 }
 0x46b   : > { %v2500_v46 = vpop.eup %2499  ;;  %v1585_v54 = vsel %vm1510_vm1, %v1569_v17, -inf  ;;  %v1568_v33 = vsub.f32 %v3320_v21, %v3488_v32 }
 0x46c   : > { %2513 = vpow2.f32 %v1815_v63  ;;  %v1610_v52 = vmul.f32 1.442695, %v1585_v54  ;;  %v3494_v40 = vpop.xlane.xlu0 %1757  ;;  %1634 = vadd.xlane.f32.xlu0 %v2500_v46 }
 0x46d   : > { %v2502_v13 = vpop.eup %2501  ;;  %v1584_v38 = vsel %vm1510_vm1, %v1568_v33, -inf  ;;  %v1780_v45 = vsub.f32 %v3314_v60, %v3494_v40 }
 0x46e   : > { %2515 = vpow2.f32 %v1610_v52  ;;  %v1608_v39 = vmul.f32 1.442695, %v1584_v38  ;;  %v3500_v58 = vpop.xlane.xlu1 %1755  ;;  %1632 = vadd.xlane.f32.xlu1 %v2502_v13 }
 0x46f   : > { %v2504_v17 = vpop.eup %2503  ;;  %v1796_v63 = vsel %vm3249_vm4, %v1780_v45, -inf  ;;  %v1779_v54 = vsub.f32 %v3320_v21, %v3500_v58 }
 0x470   : > { %2517 = vpow2.f32 %v1608_v39  ;;  %v1821_v46 = vmul.f32 1.442695, %v1796_v63  ;;  %v3506_v11 = vpop.xlane.xlu0 %1550  ;;  %1845 = vadd.xlane.f32.xlu0 %v2504_v17 }
 0x471   : > { %v2506_v33 = vpop.eup %2505  ;;  %v1795_v52 = vsel %vm3249_vm4, %v1779_v54, -inf  ;;  %v1571_v38 = vsub.f32 %v3332_v27, %v3506_v11 }
 0x472   : > { %2519 = vpow2.f32 %v1821_v46  ;;  %v1819_v13 = vmul.f32 1.442695, %v1795_v52  ;;  %v3512_v25 = vpop.xlane.xlu1 %1548  ;;  %1843 = vadd.xlane.f32.xlu1 %v2506_v33 }
 0x473   : > { %v2508_v45 = vpop.eup %2507  ;;  %v1587_v39 = vsel %vm1510_vm1, %v1571_v38, -inf  ;;  %v1570_v63 = vsub.f32 %v3338_v48, %v3512_v25 }
 0x474   : > { %2521 = vpow2.f32 %v1819_v13  ;;  %v1614_v17 = vmul.f32 1.442695, %v1587_v39  ;;  %v3518_v12 = vpop.xlane.xlu0 %1761  ;;  %1638 = vadd.xlane.f32.xlu0 %v2508_v45 }
 0x475   : > { %v2510_v54 = vpop.eup %2509  ;;  %v1586_v46 = vsel %vm1510_vm1, %v1570_v63, -inf  ;;  %v1782_v52 = vsub.f32 %v3332_v27, %v3518_v12 }
 0x476   : > { %2523 = vpow2.f32 %v1614_v17  ;;  %v1612_v33 = vmul.f32 1.442695, %v1586_v46  ;;  %v3524_v23 = vpop.xlane.xlu1 %1759  ;;  %1636 = vadd.xlane.f32.xlu1 %v2510_v54 }
 0x477   : > { %v2512_v38 = vpop.eup %2511  ;;  %v1798_v13 = vsel %vm3249_vm4, %v1782_v52, -inf  ;;  %v1781_v39 = vsub.f32 %v3338_v48, %v3524_v23 }
 0x478   : > { %2525 = vpow2.f32 %v1612_v33  ;;  %v1825_v45 = vmul.f32 1.442695, %v1798_v13  ;;  %v3530_v36 = vpop.xlane.xlu0 %1554  ;;  %1849 = vadd.xlane.f32.xlu0 %v2512_v38 }
 0x479   : > { %3767 = vst [vmem:[#allocation13_spill] sm:$0xff] %v3530_v36  ;;  %v2514_v63 = vpop.eup %2513  ;;  %v1797_v17 = vsel %vm3249_vm4, %v1781_v39, -inf  ;;  %v1573_v46 = vsub.f32 %v3350_v55, %v3530_v36 }
 0x47a   : > { %2527 = vpow2.f32 %v1825_v45  ;;  %v1823_v54 = vmul.f32 1.442695, %v1797_v17  ;;  %v3536_v24 = vpop.xlane.xlu1 %1552  ;;  %1847 = vadd.xlane.f32.xlu1 %v2514_v63 }
 0x47b   : > { %3768 = vst [vmem:[#allocation14_spill] sm:$0xff] %v3536_v24  ;;  %v2516_v52 = vpop.eup %2515  ;;  %v1589_v33 = vsel %vm1510_vm1, %v1573_v46, -inf  ;;  %v1572_v13 = vsub.f32 %v3356_v14, %v3536_v24 }
 0x47c   : > { %2529 = vpow2.f32 %v1823_v54  ;;  %v1618_v38 = vmul.f32 1.442695, %v1589_v33  ;;  %v3542_v48 = vpop.xlane.xlu0 %1765  ;;  %1642 = vadd.xlane.f32.xlu0 %v2516_v52 }
 0x47d   : > { %v2518_v39 = vpop.eup %2517  ;;  %v1588_v45 = vsel %vm1510_vm1, %v1572_v13, -inf  ;;  %v1784_v17 = vsub.f32 %v3350_v55, %v3542_v48 }
 0x47e   : > { %2531 = vpow2.f32 %v1618_v38  ;;  %v1616_v63 = vmul.f32 1.442695, %v1588_v45  ;;  %v3548_v36 = vpop.xlane.xlu1 %1763  ;;  %1640 = vadd.xlane.f32.xlu1 %v2518_v39 }
 0x47f   : > { %v2520_v46 = vpop.eup %2519  ;;  %v1800_v54 = vsel %vm3249_vm4, %v1784_v17, -inf  ;;  %v1783_v33 = vsub.f32 %v3356_v14, %v3548_v36 }
 0x480   : > { %2533 = vpow2.f32 %v1616_v63  ;;  %v1829_v52 = vmul.f32 1.442695, %v1800_v54  ;;  %1853 = vadd.xlane.f32.xlu0 %v2520_v46  ;;  %v3554_v24 = vpop.xlane.xlu0 %1558 }
 0x481   : > { %3769 = vst [vmem:[#allocation15_spill] sm:$0xff] %v3554_v24  ;;  %v2522_v13 = vpop.eup %2521  ;;  %v1799_v38 = vsel %vm3249_vm4, %v1783_v33, -inf  ;;  %v1575_v45 = vsub.f32 %v3368_v0, %v3554_v24 }
 0x482   : > { %2535 = vpow2.f32 %v1829_v52  ;;  %v1827_v39 = vmul.f32 1.442695, %v1799_v38  ;;  %1851 = vadd.xlane.f32.xlu1 %v2522_v13  ;;  %v3560_v55 = vpop.xlane.xlu1 %1556 }
 0x483   : > { %3770 = vst [vmem:[#allocation16_spill] sm:$0xff] %v3560_v55  ;;  %v2524_v17 = vpop.eup %2523  ;;  %v1591_v63 = vsel %vm1510_vm1, %v1575_v45, -inf  ;;  %v1574_v46 = vsub.f32 %v3374_v37, %v3560_v55 }
 0x484   : > { %2537 = vpow2.f32 %v1827_v39  ;;  %v1622_v54 = vmul.f32 1.442695, %v1591_v63  ;;  %1646 = vadd.xlane.f32.xlu0 %v2524_v17  ;;  %v3566_v14 = vpop.xlane.xlu0 %1769 }
 0x485   : > { %3771 = vst [vmem:[#allocation17_spill] sm:$0xff] %v3566_v14  ;;  %v2526_v33 = vpop.eup %2525  ;;  %v1590_v52 = vsel %vm1510_vm1, %v1574_v46, -inf  ;;  %v1786_v13 = vsub.f32 %v3368_v0, %v3566_v14 }
 0x486   : > { %2539 = vpow2.f32 %v1622_v54  ;;  %v1620_v38 = vmul.f32 1.442695, %v1590_v52  ;;  %1644 = vadd.xlane.f32.xlu1 %v2526_v33  ;;  %v3572_v24 = vpop.xlane.xlu1 %1767 }
 0x487   : > { %3772 = vst [vmem:[#allocation18_spill] sm:$0xff] %v3572_v24  ;;  %v2528_v45 = vpop.eup %2527  ;;  %v1802_v39 = vsel %vm3249_vm4, %v1786_v13, -inf  ;;  %v1785_v17 = vsub.f32 %v3374_v37, %v3572_v24 }
 0x488   : > { %2541 = vpow2.f32 %v1620_v38  ;;  %v1833_v63 = vmul.f32 1.442695, %v1802_v39  ;;  %1857 = vadd.xlane.f32.xlu0 %v2528_v45 }
 0x489   : > { %v2530_v55 = vpop.eup %2529  ;;  %v1801_v46 = vsel %vm3249_vm4, %v1785_v17, -inf }
 0x48a   : > { %2543 = vpow2.f32 %v1833_v63  ;;  %v1831_v54 = vmul.f32 1.442695, %v1801_v46  ;;  %1855 = vadd.xlane.f32.xlu1 %v2530_v55 }
 0x48b   : > { %v2532_v33 = vpop.eup %2531 }
 0x48c   : > { %2545 = vpow2.f32 %v1831_v54  ;;  %1650 = vadd.xlane.f32.xlu0 %v2532_v33 }
 0x48d   : > { %v2534_v52 = vpop.eup %2533 }
 0x48e   : > { %1648 = vadd.xlane.f32.xlu1 %v2534_v52 }
 0x48f   : > { %v2536_v0 = vpop.eup %2535 }
 0x490   : > { %1861 = vadd.xlane.f32.xlu0 %v2536_v0 }
 0x491   : > { %v2538_v13 = vpop.eup %2537 }
 0x492   : > { %1859 = vadd.xlane.f32.xlu1 %v2538_v13 }
 0x493   : > { %v2540_v37 = vpop.eup %2539 }
 0x494   : > { %1654 = vadd.xlane.f32.xlu0 %v2540_v37 }
 0x495   : > { %v2542_v38 = vpop.eup %2541 }
 0x496   : > { %1652 = vadd.xlane.f32.xlu1 %v2542_v38 }
 0x497   : > { %v2544_v45 = vpop.eup %2543 }
 0x498   : > { %1865 = vadd.xlane.f32.xlu0 %v2544_v45 }
 0x499   : > { %v2546_v39 = vpop.eup %2545 }
 0x49a   : > { %1863 = vadd.xlane.f32.xlu1 %v2546_v39 }
 0x4e5   : > { %v1627_v17 = vpop.xlane.xlu0 %1626 }
 0x4e6   : > { %2547 = vlog2.f32 %v1627_v17 }
 0x4e7   : > { %v1625_v55 = vpop.xlane.xlu1 %1624 }
 0x4e8   : > { %2549 = vlog2.f32 %v1625_v55 }
 0x4e9   : > { %v1838_v63 = vpop.xlane.xlu0 %1837 }
 0x4ea   : > { %2551 = vlog2.f32 %v1838_v63 }
 0x4eb   : > { %v1836_v46 = vpop.xlane.xlu1 %1835 }
 0x4ec   : > { %2553 = vlog2.f32 %v1836_v46 }
 0x4ed   : > { %v1631_v54 = vpop.xlane.xlu0 %1630 }
 0x4ee   : > { %2555 = vlog2.f32 %v1631_v54 }
 0x4ef   : > { %v1629_v0 = vpop.xlane.xlu1 %1628 }
 0x4f0   : > { %2557 = vlog2.f32 %v1629_v0 }
 0x4f1   : > { %v1842_v33 = vpop.xlane.xlu0 %1841 }
 0x4f2   : > { %2559 = vlog2.f32 %v1842_v33 }
 0x4f3   : > { %v2548_v37 = vpop.eup %2547  ;;  %v1840_v52 = vpop.xlane.xlu1 %1839 }
 0x4f4   : > { %v1659_v13 = vmul.f32 0.6931472, %v2548_v37  ;;  %2561 = vlog2.f32 %v1840_v52 }
 0x4f5   : > { %v2550_v38 = vpop.eup %2549  ;;  %v1635_v45 = vpop.xlane.xlu0 %1634 }
 0x4f6   : > { %v1657_v39 = vmul.f32 0.6931472, %v2550_v38  ;;  %2563 = vlog2.f32 %v1635_v45  ;;  %v1689_v55 = vadd.f32 %v1659_v13, %v3388_v30 }
 0x4f7   : > { %v2552_v17 = vpop.eup %2551  ;;  %v1633_v63 = vpop.xlane.xlu1 %1632 }
 0x4f8   : > { %v1870_v24 = vmul.f32 0.6931472, %v2552_v17  ;;  %2565 = vlog2.f32 %v1633_v63  ;;  %v1688_v54 = vadd.f32 %v1657_v39, %v3392_v41  ;;  %v1705_v52 = vsel %vm1510_vm1, %v1689_v55, 0.0 }
 0x4f9   : > { %v2554_v46 = vpop.eup %2553  ;;  %v1846_v0 = vpop.xlane.xlu0 %1845 }
 0x4fa   : > { %v1900_v33 = vadd.f32 %v1870_v24, %v3398_v9  ;;  %v1868_v14 = vmul.f32 0.6931472, %v2554_v46  ;;  %2567 = vlog2.f32 %v1846_v0  ;;  %v1704_v41 = vsel %vm1510_vm1, %v1688_v54, 0.0 }
 0x4fb   : > { %v2556_v37 = vpop.eup %2555  ;;  %v1844_v38 = vpop.xlane.xlu1 %1843 }
 0x4fc   : > { %v1916_v30 = vsel %vm3249_vm4, %v1900_v33, %v1705_v52  ;;  %v1899_v13 = vadd.f32 %v1868_v14, %v3404_v43  ;;  %v1663_v45 = vmul.f32 0.6931472, %v2556_v37  ;;  %2569 = vlog2.f32 %v1844_v38 }
 0x4fd   : > { %v2558_v17 = vpop.eup %2557  ;;  %v1932_v24 = vsub.f32 %v3239_v28, %v1916_v30  ;;  %v1639_v9 = vpop.xlane.xlu0 %1638 }
 0x4fe   : > { %v1915_v39 = vsel %vm3249_vm4, %v1899_v13, %v1704_v41  ;;  %v1661_v14 = vmul.f32 0.6931472, %v2558_v17  ;;  %2571 = vlog2.f32 %v1639_v9  ;;  %v1691_v28 = vadd.f32 %v1663_v45, %v3410_v49 }
 0x4ff   : > { %v2560_v43 = vpop.eup %2559  ;;  %v1948_v55 = vadd.f32 %v1932_v24, %v3167_v29  ;;  %v1931_v63 = vsub.f32 %v3244_v53, %v1915_v39  ;;  %v1637_v46 = vpop.xlane.xlu1 %1636 }
 0x500   : > { %v1874_v54 = vmul.f32 0.6931472, %v2560_v43  ;;  %2573 = vlog2.f32 %v1637_v46  ;;  %v1690_v37 = vadd.f32 %v1661_v14, %v3416_v56  ;;  %v1707_v29 = vsel %vm1510_vm1, %v1691_v28, 0.0 }
 0x501   : > { %v2562_v0 = vpop.eup %2561  ;;  %1964 = vst [vmem:[%s3596_s10 + $0x8] sm:$0xff] %v1948_v55  ;;  %v1947_v33 = vadd.f32 %v1931_v63, %v3165_v18  ;;  %v1850_v52 = vpop.xlane.xlu0 %1849 }
 0x502   : > { %v1902_v38 = vadd.f32 %v1874_v54, %v3422_v61  ;;  %v1872_v30 = vmul.f32 0.6931472, %v2562_v0  ;;  %2575 = vlog2.f32 %v1850_v52  ;;  %v1706_v56 = vsel %vm1510_vm1, %v1690_v37, 0.0 }
 0x503   : > { %v2564_v13 = vpop.eup %2563  ;;  %1963 = vst [vmem:[%s3596_s10] sm:$0xff] %v1947_v33  ;;  %v1848_v53 = vpop.xlane.xlu1 %1847 }
 0x504   : > { %v1918_v49 = vsel %vm3249_vm4, %v1902_v38, %v1707_v29  ;;  %v1901_v45 = vadd.f32 %v1872_v30, %v3428_v5  ;;  %v1667_v17 = vmul.f32 0.6931472, %v2564_v13  ;;  %2577 = vlog2.f32 %v1848_v53 }
 0x505   : > { %v2566_v18 = vpop.eup %2565  ;;  %v1934_v61 = vsub.f32 %v3260_v50, %v1918_v49  ;;  %v1643_v41 = vpop.xlane.xlu0 %1642 }
 0x506   : > { %v1917_v24 = vsel %vm3249_vm4, %v1901_v45, %v1706_v56  ;;  %v1665_v9 = vmul.f32 0.6931472, %v2566_v18  ;;  %2579 = vlog2.f32 %v1643_v41  ;;  %v1693_v43 = vadd.f32 %v1667_v17, %v3434_v34 }
 0x507   : > { %v2568_v39 = vpop.eup %2567  ;;  %v1950_v14 = vadd.f32 %v1934_v61, %v3173_v44  ;;  %v1933_v5 = vsub.f32 %v3266_v59, %v1917_v24  ;;  %v1641_v55 = vpop.xlane.xlu1 %1640 }
 0x508   : > { %v1878_v63 = vmul.f32 0.6931472, %v2568_v39  ;;  %2581 = vlog2.f32 %v1641_v55  ;;  %v1692_v46 = vadd.f32 %v1665_v9, %v3440_v15  ;;  %v1709_v44 = vsel %vm1510_vm1, %v1693_v43, 0.0 }
 0x509   : > { %v2570_v28 = vpop.eup %2569  ;;  %1966 = vst [vmem:[%s3596_s10 + $0x18] sm:$0xff] %v1950_v14  ;;  %v1949_v50 = vadd.f32 %v1933_v5, %v3171_v16  ;;  %v1854_v54 = vpop.xlane.xlu0 %1853 }
 0x50a   : > { %v1904_v0 = vadd.f32 %v1878_v63, %v3446_v31  ;;  %v1876_v33 = vmul.f32 0.6931472, %v2570_v28  ;;  %2583 = vlog2.f32 %v1854_v54  ;;  %v1708_v15 = vsel %vm1510_vm1, %v1692_v46, 0.0 }
 0x50b   : > { %v2572_v37 = vpop.eup %2571  ;;  %1965 = vst [vmem:[%s3596_s10 + $0x10] sm:$0xff] %v1949_v50  ;;  %v1852_v59 = vpop.xlane.xlu1 %1851 }
 0x50c   : > { %v1920_v34 = vsel %vm3249_vm4, %v1904_v0, %v1709_v44  ;;  %v1903_v52 = vadd.f32 %v1876_v33, %v3452_v57  ;;  %v1671_v38 = vmul.f32 0.6931472, %v2572_v37  ;;  %2585 = vlog2.f32 %v1852_v59 }
 0x50d   : > { %v2574_v16 = vpop.eup %2573  ;;  %v1936_v31 = vsub.f32 %v3278_v20, %v1920_v34  ;;  %v1647_v30 = vpop.xlane.xlu0 %1646 }
 0x50e   : > { %v1919_v13 = vsel %vm3249_vm4, %v1903_v52, %v1708_v15  ;;  %v1669_v29 = vmul.f32 0.6931472, %v2574_v16  ;;  %2587 = vlog2.f32 %v1647_v30  ;;  %v1695_v45 = vadd.f32 %v1671_v38, %v3458_v47 }
 0x50f   : > { %v2576_v53 = vpop.eup %2575  ;;  %v1952_v49 = vadd.f32 %v1936_v31, %v3179_v8  ;;  %v1935_v57 = vsub.f32 %v3284_v1, %v1919_v13  ;;  %v1645_v17 = vpop.xlane.xlu1 %1644 }
 0x510   : > { %v1882_v18 = vmul.f32 0.6931472, %v2576_v53  ;;  %2589 = vlog2.f32 %v1645_v17  ;;  %v1694_v61 = vadd.f32 %v1669_v29, %v3464_v35  ;;  %v1711_v8 = vsel %vm1510_vm1, %v1695_v45, 0.0 }
 0x511   : > { %v2578_v56 = vpop.eup %2577  ;;  %1968 = vst [vmem:[%s3596_s10 + $0x28] sm:$0xff] %v1952_v49  ;;  %v1951_v20 = vadd.f32 %v1935_v57, %v3177_v7  ;;  %v1858_v41 = vpop.xlane.xlu0 %1857 }
 0x512   : > { %v1906_v24 = vadd.f32 %v1882_v18, %v3470_v51  ;;  %v1880_v9 = vmul.f32 0.6931472, %v2578_v56  ;;  %2591 = vlog2.f32 %v1858_v41  ;;  %v1710_v35 = vsel %vm1510_vm1, %v1694_v61, 0.0 }
 0x513   : > { %v2580_v39 = vpop.eup %2579  ;;  %1967 = vst [vmem:[%s3596_s10 + $0x20] sm:$0xff] %v1951_v20  ;;  %v1856_v1 = vpop.xlane.xlu1 %1855 }
 0x514   : > { %v1922_v47 = vsel %vm3249_vm4, %v1906_v24, %v1711_v8  ;;  %v1905_v14 = vadd.f32 %v1880_v9, %v3476_v62  ;;  %v1675_v5 = vmul.f32 0.6931472, %v2580_v39  ;;  %2593 = vlog2.f32 %v1856_v1  ;;  %v3773_v1 = vld [vmem:[#allocation3_spill] sm:$0xff] }
 0x515   : > { %v2582_v7 = vpop.eup %2581  ;;  %v1938_v51 = vsub.f32 %v3296_v2, %v1922_v47  ;;  %v1651_v43 = vpop.xlane.xlu0 %1650 }
 0x516   : > { %v1921_v55 = vsel %vm3249_vm4, %v1905_v14, %v1710_v35  ;;  %v1673_v63 = vmul.f32 0.6931472, %v2582_v7  ;;  %2595 = vlog2.f32 %v1651_v43  ;;  %v1697_v46 = vadd.f32 %v1675_v5, %v3482_v42  ;;  %v3774_v14 = vld [vmem:[#allocation8_spill] sm:$0xff]  ;;  %v3775_v7 = vld [vmem:[#allocation13_spill] sm:$0xff]  ;;  %v3776_v43 = vld [vmem:[#allocation2_spill] sm:$0xff] }
 0x517   : > { %v2584_v28 = vpop.eup %2583  ;;  %v1954_v50 = vadd.f32 %v1938_v51, %v3185_v22  ;;  %v1937_v62 = vsub.f32 %v3302_v3, %v1921_v55  ;;  %v1649_v54 = vpop.xlane.xlu1 %1648 }
 0x518   : > { %v1886_v0 = vmul.f32 0.6931472, %v2584_v28  ;;  %2597 = vlog2.f32 %v1649_v54  ;;  %v1696_v37 = vadd.f32 %v1673_v63, %v3488_v32  ;;  %v1713_v22 = vsel %vm1510_vm1, %v1697_v46, 0.0  ;;  %v3777_v63 = vld [vmem:[#allocation14_spill] sm:$0xff] }
 0x519   : > { %v2586_v33 = vpop.eup %2585  ;;  %1970 = vst [vmem:[%s3596_s10 + $0x38] sm:$0xff] %v1954_v50  ;;  %v1953_v2 = vadd.f32 %v1937_v62, %v3183_v19  ;;  %v1862_v44 = vpop.xlane.xlu0 %1861 }
 0x51a   : > { %v1908_v59 = vadd.f32 %v1886_v0, %v3494_v40  ;;  %v1884_v34 = vmul.f32 0.6931472, %v2586_v33  ;;  %2599 = vlog2.f32 %v1862_v44  ;;  %v1712_v32 = vsel %vm1510_vm1, %v1696_v37, 0.0  ;;  %v3778_v44 = vld [vmem:[#allocation9_spill] sm:$0xff] }
 0x51b   : > { %v2588_v52 = vpop.eup %2587  ;;  %1969 = vst [vmem:[%s3596_s10 + $0x30] sm:$0xff] %v1953_v2  ;;  %v1860_v3 = vpop.xlane.xlu1 %1859 }
 0x51c   : > { %v1924_v42 = vsel %vm3249_vm4, %v1908_v59, %v1713_v22  ;;  %v1907_v38 = vadd.f32 %v1884_v34, %v3500_v58  ;;  %v1679_v16 = vmul.f32 0.6931472, %v2588_v52  ;;  %2601 = vlog2.f32 %v1860_v3  ;;  %v3779_v22 = vld [vmem:[#allocation5_spill] sm:$0xff] }
 0x51d   : > { %v2590_v19 = vpop.eup %2589  ;;  %v1940_v40 = vsub.f32 %v3314_v60, %v1924_v42  ;;  %v1655_v15 = vpop.xlane.xlu0 %1654  ;;  %v3780_v42 = vld [vmem:[#allocation10_spill] sm:$0xff] }
 0x51e   : > { %v1923_v31 = vsel %vm3249_vm4, %v1907_v38, %v1712_v32  ;;  %v1677_v30 = vmul.f32 0.6931472, %v2590_v19  ;;  %2603 = vlog2.f32 %v1655_v15  ;;  %v1699_v53 = vadd.f32 %v1679_v16, %v3506_v11  ;;  %v3781_v16 = vld [vmem:[#allocation15_spill] sm:$0xff] }
 0x51f   : > { %v2592_v13 = vpop.eup %2591  ;;  %v1956_v29 = vadd.f32 %v1940_v40, %v3191_v10  ;;  %v1939_v58 = vsub.f32 %v3320_v21, %v1923_v31  ;;  %v1653_v49 = vpop.xlane.xlu1 %1652  ;;  %v3782_v40 = vld [vmem:[#allocation4_spill] sm:$0xff] }
 0x520   : > { %v1890_v57 = vmul.f32 0.6931472, %v2592_v13  ;;  %2605 = vlog2.f32 %v1653_v49  ;;  %v1698_v17 = vadd.f32 %v1677_v30, %v3512_v25  ;;  %v1715_v10 = vsel %vm1510_vm1, %v1699_v53, 0.0  ;;  %v3783_v31 = vld [vmem:[#allocation16_spill] sm:$0xff]  ;;  %v3784_v13 = vld [vmem:[#allocation17_spill] sm:$0xff] }
 0x521   : > { %v2594_v45 = vpop.eup %2593  ;;  %1972 = vst [vmem:[%s3596_s10 + $0x48] sm:$0xff] %v1956_v29  ;;  %v1955_v60 = vadd.f32 %v1939_v58, %v3189_v4  ;;  %v1866_v18 = vpop.xlane.xlu0 %1865 }
 0x522   : > { %v1910_v56 = vadd.f32 %v1890_v57, %v3518_v12  ;;  %v1888_v20 = vmul.f32 0.6931472, %v2594_v45  ;;  %2607 = vlog2.f32 %v1866_v18  ;;  %v1714_v12 = vsel %vm1510_vm1, %v1698_v17, 0.0  ;;  %v3785_v57 = vld [vmem:[#allocation18_spill] sm:$0xff]  ;;  %v3786_v17 = vld [vmem:[#allocation11_spill] sm:$0xff] }
 0x523   : > { %v2596_v61 = vpop.eup %2595  ;;  %1971 = vst [vmem:[%s3596_s10 + $0x40] sm:$0xff] %v1955_v60  ;;  %v1864_v11 = vpop.xlane.xlu1 %1863 }
 0x524   : > { %v1926_v21 = vsel %vm3249_vm4, %v1910_v56, %v1715_v10  ;;  %v1909_v41 = vadd.f32 %v1888_v20, %v3524_v23  ;;  %v1683_v4 = vmul.f32 0.6931472, %v2596_v61  ;;  %2609 = vlog2.f32 %v1864_v11  ;;  %v3787_v20 = vld [vmem:[#allocation7_spill] sm:$0xff]  ;;  %v3788_v10 = vld [vmem:[#allocation12_spill] sm:$0xff] }
 0x525   : > { %v2598_v25 = vpop.eup %2597  ;;  %v1942_v24 = vsub.f32 %v3332_v27, %v1926_v21  ;;  %v3789_v21 = vld [vmem:[#allocation6_spill] sm:$0xff] }
 0x526   : > { %v1925_v9 = vsel %vm3249_vm4, %v1909_v41, %v1714_v12  ;;  %v1681_v39 = vmul.f32 0.6931472, %v2598_v25  ;;  %v1701_v23 = vadd.f32 %v1683_v4, %v3775_v7 }
 0x527   : > { %v2600_v8 = vpop.eup %2599  ;;  %v1958_v47 = vadd.f32 %v1942_v24, %v3773_v1  ;;  %v1941_v5 = vsub.f32 %v3774_v14, %v1925_v9 }
 0x528   : > { %v1894_v35 = vmul.f32 0.6931472, %v2600_v8  ;;  %v1700_v28 = vadd.f32 %v1681_v39, %v3777_v63  ;;  %v1717_v46 = vsel %vm1510_vm1, %v1701_v23, 0.0 }
 0x529   : > { %v2602_v51 = vpop.eup %2601  ;;  %1974 = vst [vmem:[%s3596_s10 + $0x58] sm:$0xff] %v1958_v47  ;;  %v1957_v55 = vadd.f32 %v1941_v5, %v3776_v43 }
 0x52a   : > { %v1912_v27 = vadd.f32 %v1894_v35, %v3542_v48  ;;  %v1892_v50 = vmul.f32 0.6931472, %v2602_v51  ;;  %v1716_v37 = vsel %vm1510_vm1, %v1700_v28, 0.0 }
 0x52b   : > { %v2604_v62 = vpop.eup %2603  ;;  %1973 = vst [vmem:[%s3596_s10 + $0x50] sm:$0xff] %v1957_v55 }
 0x52c   : > { %v1928_v54 = vsel %vm3249_vm4, %v1912_v27, %v1717_v46  ;;  %v1911_v0 = vadd.f32 %v1892_v50, %v3548_v36  ;;  %v1687_v33 = vmul.f32 0.6931472, %v2604_v62 }
 0x52d   : > { %v2606_v2 = vpop.eup %2605  ;;  %v1944_v48 = vsub.f32 %v3778_v44, %v1928_v54 }
 0x52e   : > { %v1927_v59 = vsel %vm3249_vm4, %v1911_v0, %v1716_v37  ;;  %v1685_v34 = vmul.f32 0.6931472, %v2606_v2  ;;  %v1703_v19 = vadd.f32 %v1687_v33, %v3781_v16 }
 0x52f   : > { %v2608_v52 = vpop.eup %2607  ;;  %v1960_v3 = vadd.f32 %v1944_v48, %v3779_v22  ;;  %v1943_v38 = vsub.f32 %v3780_v42, %v1927_v59 }
 0x530   : > { %v1898_v36 = vmul.f32 0.6931472, %v2608_v52  ;;  %v1702_v30 = vadd.f32 %v1685_v34, %v3783_v31  ;;  %v1719_v53 = vsel %vm1510_vm1, %v1703_v19, 0.0 }
 0x531   : > { %v2610_v32 = vpop.eup %2609  ;;  %1976 = vst [vmem:[%s3596_s10 + $0x68] sm:$0xff] %v1960_v3  ;;  %v1959_v15 = vadd.f32 %v1943_v38, %v3782_v40 }
 0x532   : > { %v1914_v29 = vadd.f32 %v1898_v36, %v3784_v13  ;;  %v1896_v58 = vmul.f32 0.6931472, %v2610_v32  ;;  %v1718_v60 = vsel %vm1510_vm1, %v1702_v30, 0.0 }
 0x533   : > { %1975 = vst [vmem:[%s3596_s10 + $0x60] sm:$0xff] %v1959_v15 }
 0x534   : > { %v1930_v49 = vsel %vm3249_vm4, %v1914_v29, %v1719_v53  ;;  %v1913_v45 = vadd.f32 %v1896_v58, %v3785_v57 }
 0x535   : > { %v1946_v18 = vsub.f32 %v3786_v17, %v1930_v49 }
 0x536   : > { %v1929_v56 = vsel %vm3249_vm4, %v1913_v45, %v1718_v60 }
 0x537   : > { %v1962_v61 = vadd.f32 %v1946_v18, %v3787_v20  ;;  %v1945_v11 = vsub.f32 %v3788_v10, %v1929_v56 }
 0x539   : > { %1978 = vst [vmem:[%s3596_s10 + $0x78] sm:$0xff] %v1962_v61  ;;  %v1961_v41 = vadd.f32 %v1945_v11, %v3789_v21 }
 0x53b   : > { %1977 = vst [vmem:[%s3596_s10 + $0x70] sm:$0xff] %v1961_v41 }
 0x53c PF: > { %s12_s9 = sadd.s32 1, %s2617_s9  }
 0x53d   : > { %p9_p4 = scmp.ge.s32.totalorder %s12_s9, 4  }
 0x53f   :  { %11 = sbr.rel (!%p9_p4) target bundleno = 1 (0x1), region = 58 }

</bundles_post_ra>
